<compile_context>
chip_gen: v7x
topology: tpu7x:2x2x1
jax: 0.10.0
libtpu: 0.0.40
codegen_flags: <defaults>
</compile_context>

<pallas_src>
import functools

import jax
import jax.numpy as jnp
from jax.experimental import pallas as pl
from jax.experimental.pallas import tpu as pltpu

LANE = 128  # TPU lane width; padded feature dims are multiples of this


def round_up(x, m):
    return (x + m - 1) // m * m


# ---------------------------------------------------------------------------
# Fused Pallas kernel: encoder hidden states, decoder LSTM, attention, output.
# ---------------------------------------------------------------------------
def attention_decoder_kernel(
    emb_x_ref,   # (T_enc, E)    f32   encoder token embeddings
    emb_y_ref,   # (T_dec, E)    f32   decoder token embeddings
    wih_e_ref,   # (E, 3*H)      bf16  encoder W_ih^T, (i,g,o) gates packed
    b_e_ref,     # (1, 3*H)      f32   encoder b_ih + b_hh, (i,g,o) packed
    wih_d_ref,   # (E, 4*H)      bf16  decoder W_ih^T, gates packed
    whh_d_ref,   # (H, 4*H)      bf16  decoder W_hh^T, gates packed
    b_d_ref,     # (1, 4*H)      f32   decoder b_ih + b_hh, gates packed
    wh_ref,      # (H, AP)       bf16  attention Wh^T (cols zero-padded)
    ws_ref,      # (H, AP)       bf16  attention Ws^T (cols zero-padded)
    battn_ref,   # (1, AP)       f32   attention bias row (b @ ones), padded
    v_ref,       # (1, AP)       f32   attention v row, padded
    w1c_hbm,     # (H, V2P)      bf16  linear1^T context half   -- HBM (ANY)
    w1s_hbm,     # (H, V2P)      bf16  linear1^T dec-state half -- HBM (ANY)
    b1_ref,      # (1, V2P)      f32
    w2_hbm,      # (V2P, VP)     bf16  linear2^T                -- HBM (ANY)
    b2_ref,      # (1, VP)       f32
    out_ref,     # (T_dec, VP)   f32   padded vocab logits (lane-dense)
    w1c_vmem,    # VMEM (H, V2P)  bf16 scratch
    w1s_vmem,    # VMEM (H, V2P)  bf16 scratch
    w2_vmem,     # VMEM (V2P, VP) bf16 scratch
    dma_sem,     # DMA semaphores (3,)
):
    H = whh_d_ref.shape[0]
    T_enc = emb_x_ref.shape[0]
    T_dec = emb_y_ref.shape[0]
    bf16 = jnp.bfloat16

    # ---- Prefetch the (largest) output-projection weights HBM->VMEM now; they
    # are only needed after encoder/LSTM/attention, so the transfer hides
    # behind that compute instead of being a serial prologue. ----------------
    cp_w1c = pltpu.make_async_copy(w1c_hbm, w1c_vmem, dma_sem.at[0])
    cp_w1s = pltpu.make_async_copy(w1s_hbm, w1s_vmem, dma_sem.at[1])
    cp_w2 = pltpu.make_async_copy(w2_hbm, w2_vmem, dma_sem.at[2])
    cp_w1c.start()
    cp_w1s.start()
    cp_w2.start()

    # ---- Encoder: each source token is an independent single LSTM step from a
    # zero (h, c) state, so the per-token loop of the original module collapses
    # into ONE batched matmul.  Forget gate is dropped (c_prev = 0). ----------
    g_e = (jnp.dot(emb_x_ref[...].astype(bf16), wih_e_ref[...],
                   preferred_element_type=jnp.float32) + b_e_ref[...])
    i_e = jax.nn.sigmoid(g_e[:, 0 * H:1 * H])
    gg_e = jnp.tanh(g_e[:, 1 * H:2 * H])
    o_e = jax.nn.sigmoid(g_e[:, 2 * H:3 * H])
    h_enc = o_e * jnp.tanh(i_e * gg_e)                    # (T_enc, H)

    # ---- Decoder LSTM: input projection hoisted out of the recurrence into a
    # single matmul; only the small (1,H)x(H,4H) h @ W_hh^T matmul (ONE 128-lane
    # MXU tile per step with H=32) stays on the serial path. ------------------
    gates_x = (jnp.dot(emb_y_ref[...].astype(bf16), wih_d_ref[...],
                       preferred_element_type=jnp.float32) + b_d_ref[...])
    whh = whh_d_ref[...]
    h = h_enc[T_enc - 1:T_enc, :]                         # h0 = last encoder h
    c = jnp.zeros_like(h)                                 # c0 = 0
    h_rows = []
    # Static unroll is fine at T_dec=8.
    # TODO(synk): switch to lax.fori_loop(..., unroll=small) writing into a
    # VMEM scratch if T_dec grows beyond ~16 (vreg live-range pressure).
    for t in range(T_dec):
        g = gates_x[t:t + 1, :] + jnp.dot(
            h.astype(bf16), whh, preferred_element_type=jnp.float32)
        i_g = jax.nn.sigmoid(g[:, 0 * H:1 * H])
        f_g = jax.nn.sigmoid(g[:, 1 * H:2 * H])
        g_g = jnp.tanh(g[:, 2 * H:3 * H])
        o_g = jax.nn.sigmoid(g[:, 3 * H:4 * H])
        c = f_g * c + i_g * g_g                           # fp32 carry
        h = o_g * jnp.tanh(c)
        h_rows.append(h)
    dec_s = jnp.concatenate(h_rows, axis=0)               # (T_dec, H), no stores

    # ---- Additive attention, batched over ALL (decoder step, encoder pos)
    # pairs.  Padded attention lanes stay exactly zero (weights/bias/v are
    # zero-padded), so they contribute nothing to the scores. -----------------
    # NOTE: softmax is over the full T_enc with no mask; do not zero-pad T_enc.
    u = jnp.dot(h_enc.astype(bf16), wh_ref[...],
                preferred_element_type=jnp.float32)                   # (Te, AP)
    s = jnp.dot(dec_s.astype(bf16), ws_ref[...],
                preferred_element_type=jnp.float32)                   # (Td, AP)
    pre = jnp.tanh((u + battn_ref[...])[None, :, :] + s[:, None, :])  # (Td,Te,AP)
    scores = jnp.sum(pre * v_ref[...][None, :, :], axis=-1)           # (Td, Te)

    m = jnp.max(scores, axis=-1, keepdims=True)           # softmax over enc pos
    p_exp = jnp.exp(scores - m)
    inv_den = pl.reciprocal(jnp.sum(p_exp, axis=-1, keepdims=True), approx=True)
    alpha = p_exp * inv_den

    context = jnp.dot(alpha.astype(bf16), h_enc.astype(bf16),
                      preferred_element_type=jnp.float32)             # (Td, H)

    # ---- Output projection; concat([context, dec_state]) expressed as two
    # matmuls against the split halves of linear1^T (no lane concat needed). --
    cp_w1c.wait()
    cp_w1s.wait()
    cp_w2.wait()
    hid1 = (jnp.dot(context.astype(bf16), w1c_vmem[...],
                    preferred_element_type=jnp.float32)
            + jnp.dot(dec_s.astype(bf16), w1s_vmem[...],
                      preferred_element_type=jnp.float32)
            + b1_ref[...])
    out_ref[...] = (jnp.dot(hid1.astype(bf16), w2_vmem[...],
                            preferred_element_type=jnp.float32) + b2_ref[...])


# ---------------------------------------------------------------------------
# Wrapper
# ---------------------------------------------------------------------------
def attention_decoder_forward(x_tokens, y_tokens, params, kparams, vocab_size):
    # nn.Embedding lookups for the single batch row the original forward uses
    # (it only ever reads x[0] / y[0]).
    # TODO(synk): the embedding gather stays as wrapper-side jnp indexing (a
    # data-dependent HBM gather); not worth a manual DMA-gather kernel here.
    emb_x = params["enc_embedding"][x_tokens[0]]           # (T_enc, E)
    emb_y = params["dec_embedding"][y_tokens[0]]           # (T_dec, E)

    kp = kparams
    T_dec = emb_y.shape[0]
    H = kp["whh_d"].shape[0]
    V2P = kp["b1"].shape[1]
    VP = kp["b2"].shape[1]

    vmem_spec = pl.BlockSpec(memory_space=pltpu.MemorySpace.VMEM)
    any_spec = pl.BlockSpec(memory_space=pl.ANY)   # stays in HBM; DMA'd in-kernel

    args = (emb_x, emb_y,
            kp["wih_e"], kp["b_e"],
            kp["wih_d"], kp["whh_d"], kp["b_d"],
            kp["whT"], kp["wsT"], kp["b_attn"], kp["v"],
            kp["w1cT"], kp["w1sT"], kp["b1"],
            kp["w2T"], kp["b2"])
    in_specs = ([vmem_spec] * 11
                + [any_spec, any_spec, vmem_spec, any_spec, vmem_spec])

    # TODO(synk): for realistic vocab sizes on v7x (64 MiB VMEM, 2 TCs), add a
    # "parallel" vocab-tiled grid axis over w2T / b2 / out for the final
    # projection instead of keeping it as a single resident block.
    logits = pl.pallas_call(
        attention_decoder_kernel,
        in_specs=in_specs,
        out_specs=pl.BlockSpec(memory_space=pltpu.MemorySpace.VMEM),
        out_shape=jax.ShapeDtypeStruct((T_dec, VP), jnp.float32),
        scratch_shapes=[
            pltpu.VMEM((H, V2P), jnp.bfloat16),
            pltpu.VMEM((H, V2P), jnp.bfloat16),
            pltpu.VMEM((V2P, VP), jnp.bfloat16),
            pltpu.SemaphoreType.DMA((3,)),
        ],
        compiler_params=pltpu.CompilerParams(
            vmem_limit_bytes=32 * 1024 * 1024),
    )(*args)
    return logits[:, :vocab_size]                          # drop vocab padding


# ---------------------------------------------------------------------------
# Parameter construction (PyTorch-like shapes) + kernel-friendly layouts
# ---------------------------------------------------------------------------
def init_params(key, vocab, emb_dim, hidden, attn_dim):
    V, E, H, A = vocab, emb_dim, hidden, attn_dim
    ks = jax.random.split(key, 18)
    kl = 1.0 / jnp.sqrt(H)

    def unif(k, shape, bound):
        return jax.random.uniform(k, shape, jnp.float32, -bound, bound)

    def q(w):
        # Weight matrices are stored at bf16 precision in the kernel; round
        # them here so kernel and reference use the exact same values.
        return w.astype(jnp.bfloat16).astype(jnp.float32)

    return {
        "enc_embedding": q(jax.random.normal(ks[0], (V, E), jnp.float32)),
        "dec_embedding": q(jax.random.normal(ks[1], (V, E), jnp.float32)),
        "enc_w_ih": q(unif(ks[2], (4 * H, E), kl)),
        "enc_w_hh": q(unif(ks[3], (4 * H, H), kl)),   # multiplies h0=0 -> inert
        "enc_b_ih": unif(ks[4], (4 * H,), kl),
        "enc_b_hh": unif(ks[5], (4 * H,), kl),
        "dec_w_ih": q(unif(ks[6], (4 * H, E), kl)),
        "dec_w_hh": q(unif(ks[7], (4 * H, H), kl)),
        "dec_b_ih": unif(ks[8], (4 * H,), kl),
        "dec_b_hh": unif(ks[9], (4 * H,), kl),
        "attn_wh": q(unif(ks[10], (A, H), 1.0 / jnp.sqrt(H))),
        "attn_ws": q(unif(ks[11], (A, H), 1.0 / jnp.sqrt(H))),
        "attn_b": unif(ks[12], (A, 1), 1.0),
        "attn_v": unif(ks[13], (1, A), 1.0 / jnp.sqrt(A)),
        "w1": q(unif(ks[14], (2 * V, 2 * H), 1.0 / jnp.sqrt(2 * H))),
        "b1": unif(ks[15], (2 * V,), 1.0 / jnp.sqrt(2 * H)),
        "w2": q(unif(ks[16], (V, 2 * V), 1.0 / jnp.sqrt(2 * V))),
        "b2": unif(ks[17], (V,), 1.0 / jnp.sqrt(2 * V)),
    }


def prepare_kernel_params(p, hidden, attn_dim, vocab):
    """Pre-transpose weights into kernel-friendly layouts.

    * LSTM gates are packed contiguously (no gate-per-128-lane padding) so the
      serial decoder recurrence multiplies against a (H, 4H) matrix only.
    * The encoder keeps only the (i, g, o) gate rows (c_prev = 0, f unused).
    * Attention / output weights are zero-padded along lanes so padded columns
      contribute exactly zero (load-bearing invariant, see kernel docstring).
    """
    H, A, V = hidden, attn_dim, vocab
    AP = round_up(A, LANE)
    VP = round_up(V, LANE)
    V2P = round_up(2 * V, LANE)
    bf16 = jnp.bfloat16

    def pad_cols(x, cols):
        return jnp.pad(x, ((0, 0), (0, cols - x.shape[1])))

    def enc_igo_wT(w):           # (4H, E) -> (E, 3H): keep i, g, o gate rows
        return jnp.concatenate([w[0:H], w[2 * H:3 * H], w[3 * H:4 * H]], 0).T

    def enc_igo_b(b_ih, b_hh):
        b = b_ih + b_hh
        return jnp.concatenate([b[0:H], b[2 * H:3 * H], b[3 * H:4 * H]])[None, :]

    w1T = p["w1"].T                                        # (2H, 2V)
    w2T = jnp.pad(p["w2"].T, ((0, V2P - 2 * V), (0, 0)))    # (V2P, V), zero rows
    return {
        "wih_e": enc_igo_wT(p["enc_w_ih"]).astype(bf16),    # (E, 3H)
        "b_e": enc_igo_b(p["enc_b_ih"], p["enc_b_hh"]),      # (1, 3H)
        "wih_d": p["dec_w_ih"].T.astype(bf16),               # (E, 4H)
        "whh_d": p["dec_w_hh"].T.astype(bf16),               # (H, 4H)
        "b_d": (p["dec_b_ih"] + p["dec_b_hh"])[None, :],      # (1, 4H)
        "whT": pad_cols(p["attn_wh"].T, AP).astype(bf16),     # (H, AP)
        "wsT": pad_cols(p["attn_ws"].T, AP).astype(bf16),     # (H, AP)
        "b_attn": pad_cols(p["attn_b"].T, AP),                # b(ones)==b.weight[:,0]
        "v": pad_cols(p["attn_v"], AP),                       # (1, AP)
        "w1cT": pad_cols(w1T[:H], V2P).astype(bf16),          # (H, V2P) context half
        "w1sT": pad_cols(w1T[H:], V2P).astype(bf16),          # (H, V2P) dec-state half
        "b1": pad_cols(p["b1"][None, :], V2P),                # (1, V2P)
        "w2T": pad_cols(w2T, VP).astype(bf16),                # (V2P, VP)
        "b2": pad_cols(p["b2"][None, :], VP),                 # (1, VP)
    }


# ---------------------------------------------------------------------------
# Pure-JAX reference mirroring the PyTorch forward (for correctness check)
# ---------------------------------------------------------------------------
def attention_decoder_ref(x_tokens, y_tokens, p, hidden_dim):
    H = hidden_dim
    emb_x = p["enc_embedding"][x_tokens[0]]
    emb_y = p["dec_embedding"][y_tokens[0]]

    def lstm_step(h, c, x_row, w_ih, w_hh, b):
        g = x_row @ w_ih.T + h @ w_hh.T + b
        i = jax.nn.sigmoid(g[:, 0 * H:1 * H])
        f = jax.nn.sigmoid(g[:, 1 * H:2 * H])
        gg = jnp.tanh(g[:, 2 * H:3 * H])
        o = jax.nn.sigmoid(g[:, 3 * H:4 * H])
        c = f * c + i * gg
        return o * jnp.tanh(c), c

    # Encoder: each token processed independently from a zero state.
    b_e = p["enc_b_ih"] + p["enc_b_hh"]
    h_enc = []
    for t in range(emb_x.shape[0]):
        h, _ = lstm_step(jnp.zeros((1, H)), jnp.zeros((1, H)),
                         emb_x[t:t + 1], p["enc_w_ih"], p["enc_w_hh"], b_e)
        h_enc.append(h)
    h_enc = jnp.concatenate(h_enc, axis=0)

    # Decoder LSTM starting from the last encoder hidden state, c0 = 0.
    b_d = p["dec_b_ih"] + p["dec_b_hh"]
    h = h_enc[-1:]
    c = jnp.zeros_like(h)
    dec = []
    for t in range(emb_y.shape[0]):
        h, c = lstm_step(h, c, emb_y[t:t + 1], p["dec_w_ih"], p["dec_w_hh"], b_d)
        dec.append(h)
    dec_s = jnp.concatenate(dec, axis=0)

    b_vec = p["attn_b"][:, 0][None, :]
    outs = []
    for j in range(dec_s.shape[0]):
        s_j = dec_s[j:j + 1]
        sc = []
        for i in range(h_enc.shape[0]):
            ei = jnp.tanh(h_enc[i:i + 1] @ p["attn_wh"].T
                          + s_j @ p["attn_ws"].T + b_vec)
            sc.append((ei @ p["attn_v"].T)[0, 0])
        a = jax.nn.softmax(jnp.stack(sc), axis=0)
        ctx = (a[:, None] * h_enc).sum(axis=0, keepdims=True)
        cat = jnp.concatenate([ctx, s_j], axis=1)
        out = cat @ p["w1"].T + p["b1"]
        out = out @ p["w2"].T + p["b2"]
        outs.append(out)
    return jnp.concatenate(outs, axis=0)


if __name__ == "__main__":
    # Small config: batch=1 (the module only uses batch row 0), T_enc=T_dec=8,
    # embedding_dim=32, hidden_dim=32, attn_dim=32, vocab=50.
    VOCAB, EMB, HID, ATTN = 50, 32, 32, 32
    T_ENC, T_DEC = 8, 8

    key = jax.random.PRNGKey(0)
    k_par, k_x, k_y = jax.random.split(key, 3)
    params = init_params(k_par, VOCAB, EMB, HID, ATTN)
    kparams = prepare_kernel_params(params, HID, ATTN, VOCAB)

    x_tokens = jax.random.randint(k_x, (1, T_ENC), 0, VOCAB, dtype=jnp.int32)
    y_tokens = jax.random.randint(k_y, (1, T_DEC), 0, VOCAB, dtype=jnp.int32)

    fwd = jax.jit(functools.partial(attention_decoder_forward,
                                    vocab_size=VOCAB))
    out = fwd(x_tokens, y_tokens, params, kparams)
    out = jax.block_until_ready(out)
    assert out.shape == (T_DEC, VOCAB)

    # Correctness vs. pure-JAX reference of the original forward.  Tolerance
    # accounts for bf16 activation casts at the MXU inputs and the approximate
    # softmax reciprocal (weights are bf16-rounded identically on both sides;
    # accumulation is fp32).
    ref = attention_decoder_ref(x_tokens, y_tokens, params, HID)
    max_err = float(jnp.max(jnp.abs(out - ref)))
    assert jnp.allclose(out, ref, rtol=2e-2, atol=2e-2), max_err

    print("KERNEL_OK")
</pallas_src>

<mosaic_0001>
module attributes {stable_mosaic.version = 11 : i64} {
  func.func @attention_decoder_kernel(%arg0: memref<8x32xf32, #tpu.memory_space<vmem>>, %arg1: memref<8x32xf32, #tpu.memory_space<vmem>>, %arg2: memref<32x96xbf16, #tpu.memory_space<vmem>>, %arg3: memref<1x96xf32, #tpu.memory_space<vmem>>, %arg4: memref<32x128xbf16, #tpu.memory_space<vmem>>, %arg5: memref<32x128xbf16, #tpu.memory_space<vmem>>, %arg6: memref<1x128xf32, #tpu.memory_space<vmem>>, %arg7: memref<32x128xbf16, #tpu.memory_space<vmem>>, %arg8: memref<32x128xbf16, #tpu.memory_space<vmem>>, %arg9: memref<1x128xf32, #tpu.memory_space<vmem>>, %arg10: memref<1x128xf32, #tpu.memory_space<vmem>>, %arg11: memref<32x128xbf16, #tpu.memory_space<any>>, %arg12: memref<32x128xbf16, #tpu.memory_space<any>>, %arg13: memref<1x128xf32, #tpu.memory_space<vmem>>, %arg14: memref<128x128xbf16, #tpu.memory_space<any>>, %arg15: memref<1x128xf32, #tpu.memory_space<vmem>>, %arg16: memref<8x128xf32, #tpu.memory_space<vmem>>, %arg17: memref<32x128xbf16, #tpu.memory_space<vmem>>, %arg18: memref<32x128xbf16, #tpu.memory_space<vmem>>, %arg19: memref<128x128xbf16, #tpu.memory_space<vmem>>, %arg20: memref<3x!tpu.dma_semaphore, #tpu.memory_space<semaphore_mem>>) attributes {dimension_semantics = [], scalar_prefetch = 0 : i64, scratch_operands = 4 : i64, tpu.core_type = #tpu.core_type<tc>} {
    %c0_i32 = arith.constant 0 : i32
    %0 = tpu.memref_slice %arg20[%c0_i32] : memref<3x!tpu.dma_semaphore, #tpu.memory_space<semaphore_mem>> -> memref<1x!tpu.dma_semaphore, #tpu.memory_space<semaphore_mem>>
    %1 = tpu.memref_squeeze %0 : memref<1x!tpu.dma_semaphore, #tpu.memory_space<semaphore_mem>> -> memref<!tpu.dma_semaphore, #tpu.memory_space<semaphore_mem>>
    tpu.enqueue_dma source(%arg11 : memref<32x128xbf16, #tpu.memory_space<any>>) target(%arg17 : memref<32x128xbf16, #tpu.memory_space<vmem>>) target_semaphore(%1 : memref<!tpu.dma_semaphore, #tpu.memory_space<semaphore_mem>>)
    %c1_i32 = arith.constant 1 : i32
    %2 = tpu.memref_slice %arg20[%c1_i32] : memref<3x!tpu.dma_semaphore, #tpu.memory_space<semaphore_mem>> -> memref<1x!tpu.dma_semaphore, #tpu.memory_space<semaphore_mem>>
    %3 = tpu.memref_squeeze %2 : memref<1x!tpu.dma_semaphore, #tpu.memory_space<semaphore_mem>> -> memref<!tpu.dma_semaphore, #tpu.memory_space<semaphore_mem>>
    tpu.enqueue_dma source(%arg12 : memref<32x128xbf16, #tpu.memory_space<any>>) target(%arg18 : memref<32x128xbf16, #tpu.memory_space<vmem>>) target_semaphore(%3 : memref<!tpu.dma_semaphore, #tpu.memory_space<semaphore_mem>>)
    %c2_i32 = arith.constant 2 : i32
    %4 = tpu.memref_slice %arg20[%c2_i32] : memref<3x!tpu.dma_semaphore, #tpu.memory_space<semaphore_mem>> -> memref<1x!tpu.dma_semaphore, #tpu.memory_space<semaphore_mem>>
    %5 = tpu.memref_squeeze %4 : memref<1x!tpu.dma_semaphore, #tpu.memory_space<semaphore_mem>> -> memref<!tpu.dma_semaphore, #tpu.memory_space<semaphore_mem>>
    tpu.enqueue_dma source(%arg14 : memref<128x128xbf16, #tpu.memory_space<any>>) target(%arg19 : memref<128x128xbf16, #tpu.memory_space<vmem>>) target_semaphore(%5 : memref<!tpu.dma_semaphore, #tpu.memory_space<semaphore_mem>>)
    %c0 = arith.constant 0 : index
    %c0_0 = arith.constant 0 : index
    %6 = vector.load %arg0[%c0, %c0_0] : memref<8x32xf32, #tpu.memory_space<vmem>>, vector<8x32xf32>
    %7 = arith.truncf %6 : vector<8x32xf32> to vector<8x32xbf16>
    %c0_1 = arith.constant 0 : index
    %c0_2 = arith.constant 0 : index
    %8 = vector.load %arg2[%c0_1, %c0_2] : memref<32x96xbf16, #tpu.memory_space<vmem>>, vector<32x96xbf16>
    %cst = arith.constant dense<0.000000e+00> : vector<8x96xf32>
    %9 = tpu.matmul %7, %8, %cst {dimension_numbers = #tpu.dot_dimension_numbers<[1], [0], [0], [1], [0, 0, 1, 1], [], []>} : vector<8x32xbf16>, vector<32x96xbf16>, vector<8x96xf32> -> vector<8x96xf32>
    %c0_3 = arith.constant 0 : index
    %c0_4 = arith.constant 0 : index
    %10 = vector.load %arg3[%c0_3, %c0_4] : memref<1x96xf32, #tpu.memory_space<vmem>>, vector<1x96xf32>
    %11 = vector.broadcast %10 : vector<1x96xf32> to vector<8x96xf32>
    %12 = arith.addf %9, %11 : vector<8x96xf32>
    %13 = vector.extract_strided_slice %12 {offsets = [0, 0], sizes = [8, 32], strides = [1, 1]} : vector<8x96xf32> to vector<8x32xf32>
    %14 = arith.negf %13 : vector<8x32xf32>
    %15 = math.exp %14 : vector<8x32xf32>
    %cst_5 = arith.constant 1.000000e+00 : f32
    %16 = vector.broadcast %cst_5 : f32 to vector<8x32xf32>
    %17 = arith.addf %16, %15 : vector<8x32xf32>
    %18 = arith.divf %16, %17 : vector<8x32xf32>
    %19 = vector.extract_strided_slice %12 {offsets = [0, 32], sizes = [8, 32], strides = [1, 1]} : vector<8x96xf32> to vector<8x32xf32>
    %20 = math.tanh %19 : vector<8x32xf32>
    %21 = vector.extract_strided_slice %12 {offsets = [0, 64], sizes = [8, 32], strides = [1, 1]} : vector<8x96xf32> to vector<8x32xf32>
    %22 = arith.negf %21 : vector<8x32xf32>
    %23 = math.exp %22 : vector<8x32xf32>
    %cst_6 = arith.constant 1.000000e+00 : f32
    %24 = vector.broadcast %cst_6 : f32 to vector<8x32xf32>
    %25 = arith.addf %24, %23 : vector<8x32xf32>
    %26 = arith.divf %24, %25 : vector<8x32xf32>
    %27 = arith.mulf %18, %20 : vector<8x32xf32>
    %28 = math.tanh %27 : vector<8x32xf32>
    %29 = arith.mulf %26, %28 : vector<8x32xf32>
    %c0_7 = arith.constant 0 : index
    %c0_8 = arith.constant 0 : index
    %30 = vector.load %arg1[%c0_7, %c0_8] : memref<8x32xf32, #tpu.memory_space<vmem>>, vector<8x32xf32>
    %31 = arith.truncf %30 : vector<8x32xf32> to vector<8x32xbf16>
    %c0_9 = arith.constant 0 : index
    %c0_10 = arith.constant 0 : index
    %32 = vector.load %arg4[%c0_9, %c0_10] : memref<32x128xbf16, #tpu.memory_space<vmem>>, vector<32x128xbf16>
    %cst_11 = arith.constant dense<0.000000e+00> : vector<8x128xf32>
    %33 = tpu.matmul %31, %32, %cst_11 {dimension_numbers = #tpu.dot_dimension_numbers<[1], [0], [0], [1], [0, 0, 1, 1], [], []>} : vector<8x32xbf16>, vector<32x128xbf16>, vector<8x128xf32> -> vector<8x128xf32>
    %c0_12 = arith.constant 0 : index
    %c0_13 = arith.constant 0 : index
    %34 = vector.load %arg6[%c0_12, %c0_13] : memref<1x128xf32, #tpu.memory_space<vmem>>, vector<1x128xf32>
    %35 = vector.broadcast %34 : vector<1x128xf32> to vector<8x128xf32>
    %36 = arith.addf %33, %35 : vector<8x128xf32>
    %c0_14 = arith.constant 0 : index
    %c0_15 = arith.constant 0 : index
    %37 = vector.load %arg5[%c0_14, %c0_15] : memref<32x128xbf16, #tpu.memory_space<vmem>>, vector<32x128xbf16>
    %38 = vector.extract_strided_slice %29 {offsets = [7, 0], sizes = [1, 32], strides = [1, 1]} : vector<8x32xf32> to vector<1x32xf32>
    %cst_16 = arith.constant 0.000000e+00 : f32
    %39 = vector.broadcast %cst_16 : f32 to vector<1x32xf32>
    %40 = vector.extract_strided_slice %36 {offsets = [0, 0], sizes = [1, 128], strides = [1, 1]} : vector<8x128xf32> to vector<1x128xf32>
    %41 = arith.truncf %38 : vector<1x32xf32> to vector<1x32xbf16>
    %cst_17 = arith.constant dense<0.000000e+00> : vector<1x128xf32>
    %42 = tpu.matmul %41, %37, %cst_17 {dimension_numbers = #tpu.dot_dimension_numbers<[1], [0], [0], [1], [0, 0, 1, 1], [], []>} : vector<1x32xbf16>, vector<32x128xbf16>, vector<1x128xf32> -> vector<1x128xf32>
    %43 = arith.addf %40, %42 : vector<1x128xf32>
    %44 = vector.extract_strided_slice %43 {offsets = [0, 0], sizes = [1, 32], strides = [1, 1]} : vector<1x128xf32> to vector<1x32xf32>
    %45 = arith.negf %44 : vector<1x32xf32>
    %46 = math.exp %45 : vector<1x32xf32>
    %cst_18 = arith.constant 1.000000e+00 : f32
    %47 = vector.broadcast %cst_18 : f32 to vector<1x32xf32>
    %48 = arith.addf %47, %46 : vector<1x32xf32>
    %49 = arith.divf %47, %48 : vector<1x32xf32>
    %50 = vector.extract_strided_slice %43 {offsets = [0, 32], sizes = [1, 32], strides = [1, 1]} : vector<1x128xf32> to vector<1x32xf32>
    %51 = arith.negf %50 : vector<1x32xf32>
    %52 = math.exp %51 : vector<1x32xf32>
    %cst_19 = arith.constant 1.000000e+00 : f32
    %53 = vector.broadcast %cst_19 : f32 to vector<1x32xf32>
    %54 = arith.addf %53, %52 : vector<1x32xf32>
    %55 = arith.divf %53, %54 : vector<1x32xf32>
    %56 = vector.extract_strided_slice %43 {offsets = [0, 64], sizes = [1, 32], strides = [1, 1]} : vector<1x128xf32> to vector<1x32xf32>
    %57 = math.tanh %56 : vector<1x32xf32>
    %58 = vector.extract_strided_slice %43 {offsets = [0, 96], sizes = [1, 32], strides = [1, 1]} : vector<1x128xf32> to vector<1x32xf32>
    %59 = arith.negf %58 : vector<1x32xf32>
    %60 = math.exp %59 : vector<1x32xf32>
    %cst_20 = arith.constant 1.000000e+00 : f32
    %61 = vector.broadcast %cst_20 : f32 to vector<1x32xf32>
    %62 = arith.addf %61, %60 : vector<1x32xf32>
    %63 = arith.divf %61, %62 : vector<1x32xf32>
    %64 = arith.mulf %55, %39 : vector<1x32xf32>
    %65 = arith.mulf %49, %57 : vector<1x32xf32>
    %66 = arith.addf %64, %65 : vector<1x32xf32>
    %67 = math.tanh %66 : vector<1x32xf32>
    %68 = arith.mulf %63, %67 : vector<1x32xf32>
    %69 = vector.extract_strided_slice %36 {offsets = [1, 0], sizes = [1, 128], strides = [1, 1]} : vector<8x128xf32> to vector<1x128xf32>
    %70 = arith.truncf %68 : vector<1x32xf32> to vector<1x32xbf16>
    %cst_21 = arith.constant dense<0.000000e+00> : vector<1x128xf32>
    %71 = tpu.matmul %70, %37, %cst_21 {dimension_numbers = #tpu.dot_dimension_numbers<[1], [0], [0], [1], [0, 0, 1, 1], [], []>} : vector<1x32xbf16>, vector<32x128xbf16>, vector<1x128xf32> -> vector<1x128xf32>
    %72 = arith.addf %69, %71 : vector<1x128xf32>
    %73 = vector.extract_strided_slice %72 {offsets = [0, 0], sizes = [1, 32], strides = [1, 1]} : vector<1x128xf32> to vector<1x32xf32>
    %74 = arith.negf %73 : vector<1x32xf32>
    %75 = math.exp %74 : vector<1x32xf32>
    %cst_22 = arith.constant 1.000000e+00 : f32
    %76 = vector.broadcast %cst_22 : f32 to vector<1x32xf32>
    %77 = arith.addf %76, %75 : vector<1x32xf32>
    %78 = arith.divf %76, %77 : vector<1x32xf32>
    %79 = vector.extract_strided_slice %72 {offsets = [0, 32], sizes = [1, 32], strides = [1, 1]} : vector<1x128xf32> to vector<1x32xf32>
    %80 = arith.negf %79 : vector<1x32xf32>
    %81 = math.exp %80 : vector<1x32xf32>
    %cst_23 = arith.constant 1.000000e+00 : f32
    %82 = vector.broadcast %cst_23 : f32 to vector<1x32xf32>
    %83 = arith.addf %82, %81 : vector<1x32xf32>
    %84 = arith.divf %82, %83 : vector<1x32xf32>
    %85 = vector.extract_strided_slice %72 {offsets = [0, 64], sizes = [1, 32], strides = [1, 1]} : vector<1x128xf32> to vector<1x32xf32>
    %86 = math.tanh %85 : vector<1x32xf32>
    %87 = vector.extract_strided_slice %72 {offsets = [0, 96], sizes = [1, 32], strides = [1, 1]} : vector<1x128xf32> to vector<1x32xf32>
    %88 = arith.negf %87 : vector<1x32xf32>
    %89 = math.exp %88 : vector<1x32xf32>
    %cst_24 = arith.constant 1.000000e+00 : f32
    %90 = vector.broadcast %cst_24 : f32 to vector<1x32xf32>
    %91 = arith.addf %90, %89 : vector<1x32xf32>
    %92 = arith.divf %90, %91 : vector<1x32xf32>
    %93 = arith.mulf %84, %66 : vector<1x32xf32>
    %94 = arith.mulf %78, %86 : vector<1x32xf32>
    %95 = arith.addf %93, %94 : vector<1x32xf32>
    %96 = math.tanh %95 : vector<1x32xf32>
    %97 = arith.mulf %92, %96 : vector<1x32xf32>
    %98 = vector.extract_strided_slice %36 {offsets = [2, 0], sizes = [1, 128], strides = [1, 1]} : vector<8x128xf32> to vector<1x128xf32>
    %99 = arith.truncf %97 : vector<1x32xf32> to vector<1x32xbf16>
    %cst_25 = arith.constant dense<0.000000e+00> : vector<1x128xf32>
    %100 = tpu.matmul %99, %37, %cst_25 {dimension_numbers = #tpu.dot_dimension_numbers<[1], [0], [0], [1], [0, 0, 1, 1], [], []>} : vector<1x32xbf16>, vector<32x128xbf16>, vector<1x128xf32> -> vector<1x128xf32>
    %101 = arith.addf %98, %100 : vector<1x128xf32>
    %102 = vector.extract_strided_slice %101 {offsets = [0, 0], sizes = [1, 32], strides = [1, 1]} : vector<1x128xf32> to vector<1x32xf32>
    %103 = arith.negf %102 : vector<1x32xf32>
    %104 = math.exp %103 : vector<1x32xf32>
    %cst_26 = arith.constant 1.000000e+00 : f32
    %105 = vector.broadcast %cst_26 : f32 to vector<1x32xf32>
    %106 = arith.addf %105, %104 : vector<1x32xf32>
    %107 = arith.divf %105, %106 : vector<1x32xf32>
    %108 = vector.extract_strided_slice %101 {offsets = [0, 32], sizes = [1, 32], strides = [1, 1]} : vector<1x128xf32> to vector<1x32xf32>
    %109 = arith.negf %108 : vector<1x32xf32>
    %110 = math.exp %109 : vector<1x32xf32>
    %cst_27 = arith.constant 1.000000e+00 : f32
    %111 = vector.broadcast %cst_27 : f32 to vector<1x32xf32>
    %112 = arith.addf %111, %110 : vector<1x32xf32>
    %113 = arith.divf %111, %112 : vector<1x32xf32>
    %114 = vector.extract_strided_slice %101 {offsets = [0, 64], sizes = [1, 32], strides = [1, 1]} : vector<1x128xf32> to vector<1x32xf32>
    %115 = math.tanh %114 : vector<1x32xf32>
    %116 = vector.extract_strided_slice %101 {offsets = [0, 96], sizes = [1, 32], strides = [1, 1]} : vector<1x128xf32> to vector<1x32xf32>
    %117 = arith.negf %116 : vector<1x32xf32>
    %118 = math.exp %117 : vector<1x32xf32>
    %cst_28 = arith.constant 1.000000e+00 : f32
    %119 = vector.broadcast %cst_28 : f32 to vector<1x32xf32>
    %120 = arith.addf %119, %118 : vector<1x32xf32>
    %121 = arith.divf %119, %120 : vector<1x32xf32>
    %122 = arith.mulf %113, %95 : vector<1x32xf32>
    %123 = arith.mulf %107, %115 : vector<1x32xf32>
    %124 = arith.addf %122, %123 : vector<1x32xf32>
    %125 = math.tanh %124 : vector<1x32xf32>
    %126 = arith.mulf %121, %125 : vector<1x32xf32>
    %127 = vector.extract_strided_slice %36 {offsets = [3, 0], sizes = [1, 128], strides = [1, 1]} : vector<8x128xf32> to vector<1x128xf32>
    %128 = arith.truncf %126 : vector<1x32xf32> to vector<1x32xbf16>
    %cst_29 = arith.constant dense<0.000000e+00> : vector<1x128xf32>
    %129 = tpu.matmul %128, %37, %cst_29 {dimension_numbers = #tpu.dot_dimension_numbers<[1], [0], [0], [1], [0, 0, 1, 1], [], []>} : vector<1x32xbf16>, vector<32x128xbf16>, vector<1x128xf32> -> vector<1x128xf32>
    %130 = arith.addf %127, %129 : vector<1x128xf32>
    %131 = vector.extract_strided_slice %130 {offsets = [0, 0], sizes = [1, 32], strides = [1, 1]} : vector<1x128xf32> to vector<1x32xf32>
    %132 = arith.negf %131 : vector<1x32xf32>
    %133 = math.exp %132 : vector<1x32xf32>
    %cst_30 = arith.constant 1.000000e+00 : f32
    %134 = vector.broadcast %cst_30 : f32 to vector<1x32xf32>
    %135 = arith.addf %134, %133 : vector<1x32xf32>
    %136 = arith.divf %134, %135 : vector<1x32xf32>
    %137 = vector.extract_strided_slice %130 {offsets = [0, 32], sizes = [1, 32], strides = [1, 1]} : vector<1x128xf32> to vector<1x32xf32>
    %138 = arith.negf %137 : vector<1x32xf32>
    %139 = math.exp %138 : vector<1x32xf32>
    %cst_31 = arith.constant 1.000000e+00 : f32
    %140 = vector.broadcast %cst_31 : f32 to vector<1x32xf32>
    %141 = arith.addf %140, %139 : vector<1x32xf32>
    %142 = arith.divf %140, %141 : vector<1x32xf32>
    %143 = vector.extract_strided_slice %130 {offsets = [0, 64], sizes = [1, 32], strides = [1, 1]} : vector<1x128xf32> to vector<1x32xf32>
    %144 = math.tanh %143 : vector<1x32xf32>
    %145 = vector.extract_strided_slice %130 {offsets = [0, 96], sizes = [1, 32], strides = [1, 1]} : vector<1x128xf32> to vector<1x32xf32>
    %146 = arith.negf %145 : vector<1x32xf32>
    %147 = math.exp %146 : vector<1x32xf32>
    %cst_32 = arith.constant 1.000000e+00 : f32
    %148 = vector.broadcast %cst_32 : f32 to vector<1x32xf32>
    %149 = arith.addf %148, %147 : vector<1x32xf32>
    %150 = arith.divf %148, %149 : vector<1x32xf32>
    %151 = arith.mulf %142, %124 : vector<1x32xf32>
    %152 = arith.mulf %136, %144 : vector<1x32xf32>
    %153 = arith.addf %151, %152 : vector<1x32xf32>
    %154 = math.tanh %153 : vector<1x32xf32>
    %155 = arith.mulf %150, %154 : vector<1x32xf32>
    %156 = vector.extract_strided_slice %36 {offsets = [4, 0], sizes = [1, 128], strides = [1, 1]} : vector<8x128xf32> to vector<1x128xf32>
    %157 = arith.truncf %155 : vector<1x32xf32> to vector<1x32xbf16>
    %cst_33 = arith.constant dense<0.000000e+00> : vector<1x128xf32>
    %158 = tpu.matmul %157, %37, %cst_33 {dimension_numbers = #tpu.dot_dimension_numbers<[1], [0], [0], [1], [0, 0, 1, 1], [], []>} : vector<1x32xbf16>, vector<32x128xbf16>, vector<1x128xf32> -> vector<1x128xf32>
    %159 = arith.addf %156, %158 : vector<1x128xf32>
    %160 = vector.extract_strided_slice %159 {offsets = [0, 0], sizes = [1, 32], strides = [1, 1]} : vector<1x128xf32> to vector<1x32xf32>
    %161 = arith.negf %160 : vector<1x32xf32>
    %162 = math.exp %161 : vector<1x32xf32>
    %cst_34 = arith.constant 1.000000e+00 : f32
    %163 = vector.broadcast %cst_34 : f32 to vector<1x32xf32>
    %164 = arith.addf %163, %162 : vector<1x32xf32>
    %165 = arith.divf %163, %164 : vector<1x32xf32>
    %166 = vector.extract_strided_slice %159 {offsets = [0, 32], sizes = [1, 32], strides = [1, 1]} : vector<1x128xf32> to vector<1x32xf32>
    %167 = arith.negf %166 : vector<1x32xf32>
    %168 = math.exp %167 : vector<1x32xf32>
    %cst_35 = arith.constant 1.000000e+00 : f32
    %169 = vector.broadcast %cst_35 : f32 to vector<1x32xf32>
    %170 = arith.addf %169, %168 : vector<1x32xf32>
    %171 = arith.divf %169, %170 : vector<1x32xf32>
    %172 = vector.extract_strided_slice %159 {offsets = [0, 64], sizes = [1, 32], strides = [1, 1]} : vector<1x128xf32> to vector<1x32xf32>
    %173 = math.tanh %172 : vector<1x32xf32>
    %174 = vector.extract_strided_slice %159 {offsets = [0, 96], sizes = [1, 32], strides = [1, 1]} : vector<1x128xf32> to vector<1x32xf32>
    %175 = arith.negf %174 : vector<1x32xf32>
    %176 = math.exp %175 : vector<1x32xf32>
    %cst_36 = arith.constant 1.000000e+00 : f32
    %177 = vector.broadcast %cst_36 : f32 to vector<1x32xf32>
    %178 = arith.addf %177, %176 : vector<1x32xf32>
    %179 = arith.divf %177, %178 : vector<1x32xf32>
    %180 = arith.mulf %171, %153 : vector<1x32xf32>
    %181 = arith.mulf %165, %173 : vector<1x32xf32>
    %182 = arith.addf %180, %181 : vector<1x32xf32>
    %183 = math.tanh %182 : vector<1x32xf32>
    %184 = arith.mulf %179, %183 : vector<1x32xf32>
    %185 = vector.extract_strided_slice %36 {offsets = [5, 0], sizes = [1, 128], strides = [1, 1]} : vector<8x128xf32> to vector<1x128xf32>
    %186 = arith.truncf %184 : vector<1x32xf32> to vector<1x32xbf16>
    %cst_37 = arith.constant dense<0.000000e+00> : vector<1x128xf32>
    %187 = tpu.matmul %186, %37, %cst_37 {dimension_numbers = #tpu.dot_dimension_numbers<[1], [0], [0], [1], [0, 0, 1, 1], [], []>} : vector<1x32xbf16>, vector<32x128xbf16>, vector<1x128xf32> -> vector<1x128xf32>
    %188 = arith.addf %185, %187 : vector<1x128xf32>
    %189 = vector.extract_strided_slice %188 {offsets = [0, 0], sizes = [1, 32], strides = [1, 1]} : vector<1x128xf32> to vector<1x32xf32>
    %190 = arith.negf %189 : vector<1x32xf32>
    %191 = math.exp %190 : vector<1x32xf32>
    %cst_38 = arith.constant 1.000000e+00 : f32
    %192 = vector.broadcast %cst_38 : f32 to vector<1x32xf32>
    %193 = arith.addf %192, %191 : vector<1x32xf32>
    %194 = arith.divf %192, %193 : vector<1x32xf32>
    %195 = vector.extract_strided_slice %188 {offsets = [0, 32], sizes = [1, 32], strides = [1, 1]} : vector<1x128xf32> to vector<1x32xf32>
    %196 = arith.negf %195 : vector<1x32xf32>
    %197 = math.exp %196 : vector<1x32xf32>
    %cst_39 = arith.constant 1.000000e+00 : f32
    %198 = vector.broadcast %cst_39 : f32 to vector<1x32xf32>
    %199 = arith.addf %198, %197 : vector<1x32xf32>
    %200 = arith.divf %198, %199 : vector<1x32xf32>
    %201 = vector.extract_strided_slice %188 {offsets = [0, 64], sizes = [1, 32], strides = [1, 1]} : vector<1x128xf32> to vector<1x32xf32>
    %202 = math.tanh %201 : vector<1x32xf32>
    %203 = vector.extract_strided_slice %188 {offsets = [0, 96], sizes = [1, 32], strides = [1, 1]} : vector<1x128xf32> to vector<1x32xf32>
    %204 = arith.negf %203 : vector<1x32xf32>
    %205 = math.exp %204 : vector<1x32xf32>
    %cst_40 = arith.constant 1.000000e+00 : f32
    %206 = vector.broadcast %cst_40 : f32 to vector<1x32xf32>
    %207 = arith.addf %206, %205 : vector<1x32xf32>
    %208 = arith.divf %206, %207 : vector<1x32xf32>
    %209 = arith.mulf %200, %182 : vector<1x32xf32>
    %210 = arith.mulf %194, %202 : vector<1x32xf32>
    %211 = arith.addf %209, %210 : vector<1x32xf32>
    %212 = math.tanh %211 : vector<1x32xf32>
    %213 = arith.mulf %208, %212 : vector<1x32xf32>
    %214 = vector.extract_strided_slice %36 {offsets = [6, 0], sizes = [1, 128], strides = [1, 1]} : vector<8x128xf32> to vector<1x128xf32>
    %215 = arith.truncf %213 : vector<1x32xf32> to vector<1x32xbf16>
    %cst_41 = arith.constant dense<0.000000e+00> : vector<1x128xf32>
    %216 = tpu.matmul %215, %37, %cst_41 {dimension_numbers = #tpu.dot_dimension_numbers<[1], [0], [0], [1], [0, 0, 1, 1], [], []>} : vector<1x32xbf16>, vector<32x128xbf16>, vector<1x128xf32> -> vector<1x128xf32>
    %217 = arith.addf %214, %216 : vector<1x128xf32>
    %218 = vector.extract_strided_slice %217 {offsets = [0, 0], sizes = [1, 32], strides = [1, 1]} : vector<1x128xf32> to vector<1x32xf32>
    %219 = arith.negf %218 : vector<1x32xf32>
    %220 = math.exp %219 : vector<1x32xf32>
    %cst_42 = arith.constant 1.000000e+00 : f32
    %221 = vector.broadcast %cst_42 : f32 to vector<1x32xf32>
    %222 = arith.addf %221, %220 : vector<1x32xf32>
    %223 = arith.divf %221, %222 : vector<1x32xf32>
    %224 = vector.extract_strided_slice %217 {offsets = [0, 32], sizes = [1, 32], strides = [1, 1]} : vector<1x128xf32> to vector<1x32xf32>
    %225 = arith.negf %224 : vector<1x32xf32>
    %226 = math.exp %225 : vector<1x32xf32>
    %cst_43 = arith.constant 1.000000e+00 : f32
    %227 = vector.broadcast %cst_43 : f32 to vector<1x32xf32>
    %228 = arith.addf %227, %226 : vector<1x32xf32>
    %229 = arith.divf %227, %228 : vector<1x32xf32>
    %230 = vector.extract_strided_slice %217 {offsets = [0, 64], sizes = [1, 32], strides = [1, 1]} : vector<1x128xf32> to vector<1x32xf32>
    %231 = math.tanh %230 : vector<1x32xf32>
    %232 = vector.extract_strided_slice %217 {offsets = [0, 96], sizes = [1, 32], strides = [1, 1]} : vector<1x128xf32> to vector<1x32xf32>
    %233 = arith.negf %232 : vector<1x32xf32>
    %234 = math.exp %233 : vector<1x32xf32>
    %cst_44 = arith.constant 1.000000e+00 : f32
    %235 = vector.broadcast %cst_44 : f32 to vector<1x32xf32>
    %236 = arith.addf %235, %234 : vector<1x32xf32>
    %237 = arith.divf %235, %236 : vector<1x32xf32>
    %238 = arith.mulf %229, %211 : vector<1x32xf32>
    %239 = arith.mulf %223, %231 : vector<1x32xf32>
    %240 = arith.addf %238, %239 : vector<1x32xf32>
    %241 = math.tanh %240 : vector<1x32xf32>
    %242 = arith.mulf %237, %241 : vector<1x32xf32>
    %243 = vector.extract_strided_slice %36 {offsets = [7, 0], sizes = [1, 128], strides = [1, 1]} : vector<8x128xf32> to vector<1x128xf32>
    %244 = arith.truncf %242 : vector<1x32xf32> to vector<1x32xbf16>
    %cst_45 = arith.constant dense<0.000000e+00> : vector<1x128xf32>
    %245 = tpu.matmul %244, %37, %cst_45 {dimension_numbers = #tpu.dot_dimension_numbers<[1], [0], [0], [1], [0, 0, 1, 1], [], []>} : vector<1x32xbf16>, vector<32x128xbf16>, vector<1x128xf32> -> vector<1x128xf32>
    %246 = arith.addf %243, %245 : vector<1x128xf32>
    %247 = vector.extract_strided_slice %246 {offsets = [0, 0], sizes = [1, 32], strides = [1, 1]} : vector<1x128xf32> to vector<1x32xf32>
    %248 = arith.negf %247 : vector<1x32xf32>
    %249 = math.exp %248 : vector<1x32xf32>
    %cst_46 = arith.constant 1.000000e+00 : f32
    %250 = vector.broadcast %cst_46 : f32 to vector<1x32xf32>
    %251 = arith.addf %250, %249 : vector<1x32xf32>
    %252 = arith.divf %250, %251 : vector<1x32xf32>
    %253 = vector.extract_strided_slice %246 {offsets = [0, 32], sizes = [1, 32], strides = [1, 1]} : vector<1x128xf32> to vector<1x32xf32>
    %254 = arith.negf %253 : vector<1x32xf32>
    %255 = math.exp %254 : vector<1x32xf32>
    %cst_47 = arith.constant 1.000000e+00 : f32
    %256 = vector.broadcast %cst_47 : f32 to vector<1x32xf32>
    %257 = arith.addf %256, %255 : vector<1x32xf32>
    %258 = arith.divf %256, %257 : vector<1x32xf32>
    %259 = vector.extract_strided_slice %246 {offsets = [0, 64], sizes = [1, 32], strides = [1, 1]} : vector<1x128xf32> to vector<1x32xf32>
    %260 = math.tanh %259 : vector<1x32xf32>
    %261 = vector.extract_strided_slice %246 {offsets = [0, 96], sizes = [1, 32], strides = [1, 1]} : vector<1x128xf32> to vector<1x32xf32>
    %262 = arith.negf %261 : vector<1x32xf32>
    %263 = math.exp %262 : vector<1x32xf32>
    %cst_48 = arith.constant 1.000000e+00 : f32
    %264 = vector.broadcast %cst_48 : f32 to vector<1x32xf32>
    %265 = arith.addf %264, %263 : vector<1x32xf32>
    %266 = arith.divf %264, %265 : vector<1x32xf32>
    %267 = arith.mulf %258, %240 : vector<1x32xf32>
    %268 = arith.mulf %252, %260 : vector<1x32xf32>
    %269 = arith.addf %267, %268 : vector<1x32xf32>
    %270 = math.tanh %269 : vector<1x32xf32>
    %271 = arith.mulf %266, %270 : vector<1x32xf32>
    %272 = tpu.concatenate %68, %97, %126, %155, %184, %213, %242, %271 in 0 : vector<1x32xf32>, vector<1x32xf32>, vector<1x32xf32>, vector<1x32xf32>, vector<1x32xf32>, vector<1x32xf32>, vector<1x32xf32>, vector<1x32xf32> -> vector<8x32xf32>
    %273 = arith.truncf %29 : vector<8x32xf32> to vector<8x32xbf16>
    %c0_49 = arith.constant 0 : index
    %c0_50 = arith.constant 0 : index
    %274 = vector.load %arg7[%c0_49, %c0_50] : memref<32x128xbf16, #tpu.memory_space<vmem>>, vector<32x128xbf16>
    %cst_51 = arith.constant dense<0.000000e+00> : vector<8x128xf32>
    %275 = tpu.matmul %273, %274, %cst_51 {dimension_numbers = #tpu.dot_dimension_numbers<[1], [0], [0], [1], [0, 0, 1, 1], [], []>} : vector<8x32xbf16>, vector<32x128xbf16>, vector<8x128xf32> -> vector<8x128xf32>
    %276 = arith.truncf %272 : vector<8x32xf32> to vector<8x32xbf16>
    %c0_52 = arith.constant 0 : index
    %c0_53 = arith.constant 0 : index
    %277 = vector.load %arg8[%c0_52, %c0_53] : memref<32x128xbf16, #tpu.memory_space<vmem>>, vector<32x128xbf16>
    %cst_54 = arith.constant dense<0.000000e+00> : vector<8x128xf32>
    %278 = tpu.matmul %276, %277, %cst_54 {dimension_numbers = #tpu.dot_dimension_numbers<[1], [0], [0], [1], [0, 0, 1, 1], [], []>} : vector<8x32xbf16>, vector<32x128xbf16>, vector<8x128xf32> -> vector<8x128xf32>
    %c0_55 = arith.constant 0 : index
    %c0_56 = arith.constant 0 : index
    %279 = vector.load %arg9[%c0_55, %c0_56] : memref<1x128xf32, #tpu.memory_space<vmem>>, vector<1x128xf32>
    %280 = vector.broadcast %279 : vector<1x128xf32> to vector<8x128xf32>
    %281 = arith.addf %275, %280 : vector<8x128xf32>
    %282 = vector.shape_cast %281 : vector<8x128xf32> to vector<1x8x128xf32>
    %283 = vector.shape_cast %278 : vector<8x128xf32> to vector<8x1x128xf32>
    %284 = vector.broadcast %282 : vector<1x8x128xf32> to vector<8x8x128xf32>
    %285 = vector.broadcast %283 : vector<8x1x128xf32> to vector<8x8x128xf32>
    %286 = arith.addf %284, %285 : vector<8x8x128xf32>
    %287 = math.tanh %286 : vector<8x8x128xf32>
    %c0_57 = arith.constant 0 : index
    %c0_58 = arith.constant 0 : index
    %288 = vector.load %arg10[%c0_57, %c0_58] : memref<1x128xf32, #tpu.memory_space<vmem>>, vector<1x128xf32>
    %289 = vector.shape_cast %288 : vector<1x128xf32> to vector<1x1x128xf32>
    %290 = vector.broadcast %289 : vector<1x1x128xf32> to vector<8x8x128xf32>
    %291 = arith.mulf %287, %290 : vector<8x8x128xf32>
    %cst_59 = arith.constant dense<0.000000e+00> : vector<8x8xf32>
    %292 = vector.multi_reduction <add>, %291, %cst_59 [2] : vector<8x8x128xf32> to vector<8x8xf32>
    %cst_60 = arith.constant dense<0xFF800000> : vector<8xf32>
    %293 = vector.multi_reduction <maximumf>, %292, %cst_60 [1] : vector<8x8xf32> to vector<8xf32>
    %294 = vector.shape_cast %293 : vector<8xf32> to vector<8x1xf32>
    %295 = vector.broadcast %294 : vector<8x1xf32> to vector<8x8xf32>
    %296 = arith.subf %292, %295 : vector<8x8xf32>
    %297 = math.exp %296 : vector<8x8xf32>
    %cst_61 = arith.constant dense<0.000000e+00> : vector<8xf32>
    %298 = vector.multi_reduction <add>, %297, %cst_61 [1] : vector<8x8xf32> to vector<8xf32>
    %299 = vector.shape_cast %298 : vector<8xf32> to vector<8x1xf32>
    %300 = tpu.reciprocal %299 {approx = true} : vector<8x1xf32> -> vector<8x1xf32>
    %301 = vector.broadcast %300 : vector<8x1xf32> to vector<8x8xf32>
    %302 = arith.mulf %297, %301 : vector<8x8xf32>
    %303 = arith.truncf %302 : vector<8x8xf32> to vector<8x8xbf16>
    %304 = arith.truncf %29 : vector<8x32xf32> to vector<8x32xbf16>
    %cst_62 = arith.constant dense<0.000000e+00> : vector<8x32xf32>
    %305 = tpu.matmul %303, %304, %cst_62 {dimension_numbers = #tpu.dot_dimension_numbers<[1], [0], [0], [1], [0, 0, 1, 1], [], []>} : vector<8x8xbf16>, vector<8x32xbf16>, vector<8x32xf32> -> vector<8x32xf32>
    %c0_i32_63 = arith.constant 0 : i32
    %306 = tpu.memref_slice %arg20[%c0_i32_63] : memref<3x!tpu.dma_semaphore, #tpu.memory_space<semaphore_mem>> -> memref<1x!tpu.dma_semaphore, #tpu.memory_space<semaphore_mem>>
    %307 = tpu.memref_squeeze %306 : memref<1x!tpu.dma_semaphore, #tpu.memory_space<semaphore_mem>> -> memref<!tpu.dma_semaphore, #tpu.memory_space<semaphore_mem>>
    tpu.wait_dma2 semaphore(%307 : memref<!tpu.dma_semaphore, #tpu.memory_space<semaphore_mem>>) src(%arg11 : memref<32x128xbf16, #tpu.memory_space<any>>) dst(%arg17 : memref<32x128xbf16, #tpu.memory_space<vmem>>)
    %c1_i32_64 = arith.constant 1 : i32
    %308 = tpu.memref_slice %arg20[%c1_i32_64] : memref<3x!tpu.dma_semaphore, #tpu.memory_space<semaphore_mem>> -> memref<1x!tpu.dma_semaphore, #tpu.memory_space<semaphore_mem>>
    %309 = tpu.memref_squeeze %308 : memref<1x!tpu.dma_semaphore, #tpu.memory_space<semaphore_mem>> -> memref<!tpu.dma_semaphore, #tpu.memory_space<semaphore_mem>>
    tpu.wait_dma2 semaphore(%309 : memref<!tpu.dma_semaphore, #tpu.memory_space<semaphore_mem>>) src(%arg12 : memref<32x128xbf16, #tpu.memory_space<any>>) dst(%arg18 : memref<32x128xbf16, #tpu.memory_space<vmem>>)
    %c2_i32_65 = arith.constant 2 : i32
    %310 = tpu.memref_slice %arg20[%c2_i32_65] : memref<3x!tpu.dma_semaphore, #tpu.memory_space<semaphore_mem>> -> memref<1x!tpu.dma_semaphore, #tpu.memory_space<semaphore_mem>>
    %311 = tpu.memref_squeeze %310 : memref<1x!tpu.dma_semaphore, #tpu.memory_space<semaphore_mem>> -> memref<!tpu.dma_semaphore, #tpu.memory_space<semaphore_mem>>
    tpu.wait_dma2 semaphore(%311 : memref<!tpu.dma_semaphore, #tpu.memory_space<semaphore_mem>>) src(%arg14 : memref<128x128xbf16, #tpu.memory_space<any>>) dst(%arg19 : memref<128x128xbf16, #tpu.memory_space<vmem>>)
    %312 = arith.truncf %305 : vector<8x32xf32> to vector<8x32xbf16>
    %c0_66 = arith.constant 0 : index
    %c0_67 = arith.constant 0 : index
    %313 = vector.load %arg17[%c0_66, %c0_67] : memref<32x128xbf16, #tpu.memory_space<vmem>>, vector<32x128xbf16>
    %cst_68 = arith.constant dense<0.000000e+00> : vector<8x128xf32>
    %314 = tpu.matmul %312, %313, %cst_68 {dimension_numbers = #tpu.dot_dimension_numbers<[1], [0], [0], [1], [0, 0, 1, 1], [], []>} : vector<8x32xbf16>, vector<32x128xbf16>, vector<8x128xf32> -> vector<8x128xf32>
    %315 = arith.truncf %272 : vector<8x32xf32> to vector<8x32xbf16>
    %c0_69 = arith.constant 0 : index
    %c0_70 = arith.constant 0 : index
    %316 = vector.load %arg18[%c0_69, %c0_70] : memref<32x128xbf16, #tpu.memory_space<vmem>>, vector<32x128xbf16>
    %cst_71 = arith.constant dense<0.000000e+00> : vector<8x128xf32>
    %317 = tpu.matmul %315, %316, %cst_71 {dimension_numbers = #tpu.dot_dimension_numbers<[1], [0], [0], [1], [0, 0, 1, 1], [], []>} : vector<8x32xbf16>, vector<32x128xbf16>, vector<8x128xf32> -> vector<8x128xf32>
    %318 = arith.addf %314, %317 : vector<8x128xf32>
    %c0_72 = arith.constant 0 : index
    %c0_73 = arith.constant 0 : index
    %319 = vector.load %arg13[%c0_72, %c0_73] : memref<1x128xf32, #tpu.memory_space<vmem>>, vector<1x128xf32>
    %320 = vector.broadcast %319 : vector<1x128xf32> to vector<8x128xf32>
    %321 = arith.addf %318, %320 : vector<8x128xf32>
    %322 = arith.truncf %321 : vector<8x128xf32> to vector<8x128xbf16>
    %c0_74 = arith.constant 0 : index
    %c0_75 = arith.constant 0 : index
    %323 = vector.load %arg19[%c0_74, %c0_75] : memref<128x128xbf16, #tpu.memory_space<vmem>>, vector<128x128xbf16>
    %cst_76 = arith.constant dense<0.000000e+00> : vector<8x128xf32>
    %324 = tpu.matmul %322, %323, %cst_76 {dimension_numbers = #tpu.dot_dimension_numbers<[1], [0], [0], [1], [0, 0, 1, 1], [], []>} : vector<8x128xbf16>, vector<128x128xbf16>, vector<8x128xf32> -> vector<8x128xf32>
    %c0_77 = arith.constant 0 : index
    %c0_78 = arith.constant 0 : index
    %325 = vector.load %arg15[%c0_77, %c0_78] : memref<1x128xf32, #tpu.memory_space<vmem>>, vector<1x128xf32>
    %326 = vector.broadcast %325 : vector<1x128xf32> to vector<8x128xf32>
    %327 = arith.addf %324, %326 : vector<8x128xf32>
    %c0_79 = arith.constant 0 : index
    %c0_80 = arith.constant 0 : index
    %328 = vector.load %arg16[%c0_79, %c0_80] : memref<8x128xf32, #tpu.memory_space<vmem>>, vector<8x128xf32>
    tpu.vector_store %arg16[%c0_79, %c0_80], %327 {strides = array<i32>} : memref<8x128xf32, #tpu.memory_space<vmem>>, vector<8x128xf32>,
    return
  }
}

</mosaic_0001>

<bundles_post_ra>
// kernel: attention_decoder_forward.1
= control target key start
LH: loop header
LB: loop body
LE: loop exit
PB: predicated region body
PF: predicated region fallthrough
CT: control target
= control target key end

     0   :  { %s2778_s0 = inlined_call_operand.vmem [shape: f32[8,32], index: 0, kind: input, shape index: {}]   ;;  %s2779_s1 = inlined_call_operand.vmem [shape: f32[8,32], index: 1, kind: input, shape index: {}]   ;;  %s2780_s2 = inlined_call_operand.vmem [shape: bf16[32,96], index: 2, kind: input, shape index: {}]   ;;  %s2781_s3 = inlined_call_operand.vmem [shape: f32[1,96], index: 3, kind: input, shape index: {}]   ;;  %s2782_s4 = inlined_call_operand.vmem [shape: bf16[32,128], index: 4, kind: input, shape index: {}]   ;;  %s2783_s5 = inlined_call_operand.vmem [shape: bf16[32,128], index: 5, kind: input, shape index: {}]   ;;  %s2784_s6 = inlined_call_operand.vmem [shape: f32[1,128], index: 6, kind: input, shape index: {}]   ;;  %s2785_s7 = inlined_call_operand.vmem [shape: bf16[32,128], index: 7, kind: input, shape index: {}]   ;;  %s2786_s8 = inlined_call_operand.vmem [shape: bf16[32,128], index: 8, kind: input, shape index: {}]   ;;  %s2787_s9 = inlined_call_operand.vmem [shape: f32[1,128], index: 9, kind: input, shape index: {}]   ;;  %s2788_s10 = inlined_call_operand.vmem [shape: f32[1,128], index: 10, kind: input, shape index: {}]   ;;  %s2789_s11 = inlined_call_operand.vmem [shape: bf16[32,128], index: 11, kind: input, shape index: {}]   ;;  %s2790_s12 = inlined_call_operand.vmem [shape: bf16[32,128], index: 12, kind: input, shape index: {}]   ;;  %s2791_s13 = inlined_call_operand.vmem [shape: f32[1,128], index: 13, kind: input, shape index: {}]   ;;  %s2792_s14 = inlined_call_operand.vmem [shape: bf16[128,128], index: 14, kind: input, shape index: {}]   ;;  %s2793_s15 = inlined_call_operand.vmem [shape: f32[1,128], index: 15, kind: input, shape index: {}]   ;;  %s2794_s16 = inlined_call_operand.hbm [shape: f32[8,128], index: 16, kind: output, shape index: {}]  }
   0x1   :  { %2795 = sst [smem:[#allocation15_spill]] %s2778_s0 }
   0x2   :  { %21 = vsyncpa [#allocation7], 0  ;;  %v2372_v0 = vld [vmem:[%s2789_s11] sm:$0xff]  ;;  %v2377_v1 = vld [vmem:[%s2789_s11 + $0x8] sm:$0xff] }
   0x3   :  { %92 = vsyncadd [#allocation5], 256  ;;  %v2382_v2 = vld [vmem:[%s2790_s12] sm:$0xff]  ;;  %v2387_v3 = vld [vmem:[%s2790_s12 + $0x8] sm:$0xff] }
   0x4   :  { %137 = vsyncadd [#allocation5 + $0x1], 256  ;;  %v2392_v4 = vld [vmem:[%s2792_s14] sm:$0xff]  ;;  %v2397_v5 = vld [vmem:[%s2792_s14 + $0x8] sm:$0xff] }
   0x5   :  { %v2402_v6 = vld [vmem:[%s2792_s14 + $0x10] sm:$0xff]  ;;  %v2407_v7 = vld [vmem:[%s2792_s14 + $0x18] sm:$0xff]  ;;  %v2412_v8 = vld [vmem:[%s2792_s14 + $0x20] sm:$0xff] }
   0x6   :  { %v2417_v9 = vld [vmem:[%s2792_s14 + $0x28] sm:$0xff]  ;;  %v2422_v10 = vld [vmem:[%s2792_s14 + $0x30] sm:$0xff]  ;;  %v2427_v11 = vld [vmem:[%s2792_s14 + $0x38] sm:$0xff] }
   0x7   :  { %194 = vsyncadd [#allocation5 + $0x2], 1024  ;;  %v2130_v12 = vld [vmem:[%s2780_s2] sm:$0xff]   ;;  %v2276_v13 = vmov 0.0   ;;  %v2131_v14 = vld [vmem:[%s2780_s2 + $0x8] sm:$0xff]   ;;  %s2796_s18 = sld [smem:[#allocation15_spill]] }
   0x8   :  { %1982 = vmatprep.subr.bf16.mxu0 %v2276_v13  ;;  %2006 = vmatprep.subr.bf16.mxu1 %v2276_v13  ;;  %vm220_vm0 = vcmask 261120   ;;  %vm2277_vm1 = vmmov 0   ;;  %v1886_v17 = vld [vmem:[%s2781_s3] ss:$0 sm:$0xff]  ;;  %s2278_s19 = smov 96   ;;  %v2133_v32 = vld [vmem:[%s2782_s4 + $0x8] sm:$0xff]  }
   0x9   :  { %1983 = vmatpush3.bf16.msra.mxu0 %v2130_v12  ;;  %1986 = vmatprep.mubr.msk.bf16.mxu0 %vm2277_vm1, %v2276_v13  ;;  %v2132_v30 = vld [vmem:[%s2782_s4] sm:$0xff]   ;;  %s2279_s26 = smov 64   ;;  %v2473_v36 = vld [vmem:[%s2783_s5 + $0x8] sm:$0xff]   ;;  %vm998_vm2 = vcmask 1040384   ;;  %vm1000_vm3 = vcmask 1041408   ;;  %vm1002_vm4 = vcmask 1042432  }
   0xa   :  { %1984 = vmatprep.subr.bf16.mxu0 %v2276_v13  ;;  %2010 = vmatprep.mubr.msk.bf16.mxu1 %vm2277_vm1, %v2276_v13  ;;  %v2458_v31 = vld [vmem:[%s2783_s5] sm:$0xff]   ;;  %s2280_s5 = smov 32   ;;  %vm1004_vm5 = vcmask 1043456   ;;  %vm1006_vm6 = vcmask 1044480   ;;  %vm1008_vm7 = vcmask 1045504   ;;  %vm1010_vm8 = vcmask 1046528  }
   0xb   :  { %v282_v33 = vld [vmem:[%s2779_s1] sm:$0xff]  ;;  %2007 = vmatpush3.bf16.msra.mxu1 %v2458_v31  ;;  %vm1323_vm9 = vcmask 1041409   ;;  %vm1325_vm10 = vcmask 1042434   ;;  %vm1327_vm11 = vcmask 1043459   ;;  %vm1329_vm12 = vcmask 1044484  }
   0xc   :  { %2008 = vmatprep.subr.bf16.mxu1 %v2276_v13  ;;  %v283_v35 = vpack.c.bf16 %v282_v33, %v282_v33  ;;  %v1891_v47 = vld [vmem:[%s2784_s6] ss:$0 sm:$0xff]  ;;  %vm1331_vm13 = vcmask 1045509   ;;  %vm1333_vm14 = vcmask 1046534   ;;  %vm1335_vm15 = vcmask 1047559  }
   0xd   :  { %v195_v15 = vld [vmem:[%s2796_s18] sm:$0xff]  ;;  %1985 = vmatpush3.bf16.msra.mxu0 %v2131_v14 }
   0xe   :  { %v196_v16 = vpack.c.bf16 %v195_v15, %v195_v15  ;;  %1990 = vmatprep.subr.bf16.mxu0 %v2276_v13 }
   0xf   :  { %2009 = vmatpush3.bf16.msra.mxu1 %v2473_v36 }
  0x10   :  { %1987 = vmatmul.mubr.msk.bf16.vlgmr.msra.gmra.mrb[0].mxu0 %vm220_vm0, %v196_v16  ;;  %2022 = vmatprep.subr.bf16.mxu1 %v2276_v13 }
  0x11   :  { %1994 = vmatprep.mubr.msk.bf16.mxu0 %vm2277_vm1, %v2276_v13  ;;  %1991 = vmatpush3.bf16.msra.mxu0 %v2132_v30 }
  0x12   :  { %1992 = vmatprep.subr.bf16.mxu0 %v2276_v13 }
  0x15   :  { %1993 = vmatpush3.bf16.msra.mxu0 %v2133_v32 }
  0x16   :  { %1998 = vmatprep.subr.bf16.mxu0 %v2276_v13 }
  0x18   :  { %1995 = vmatmul.mubr.msk.bf16.vlgmr.msra.gmra.mrb[4].mxu0 %vm220_vm0, %v283_v35 }
  0x19   :  { %1999 = vmatpush3.bf16.msra.mxu0 %v2458_v31  ;;  %2002 = vmatprep.mubr.msk.bf16.mxu0 %vm2277_vm1, %v2276_v13 }
  0x1a   :  { %2000 = vmatprep.subr.bf16.mxu0 %v2276_v13 }
  0x1d   :  { %2001 = vmatpush3.bf16.msra.mxu0 %v2473_v36 }
  0x1e   :  { %2014 = vmatprep.subr.bf16.mxu0 %v2276_v13 }
  0xe3   :  { %v258_v18 = vpop.f32.mrb[0].mxu0 }
  0xe4   :  { %v259_v19 = vadd.f32 %v1886_v17, %v258_v18  ;;  %v1988_v20 = vpop.f32.mrb[1].mxu0 }
  0xe5   :  { %v261_v21 = vpop.f32.mrb[2].mxu0 }
  0xe6   :  { %2140 = vtanh.f32 %v259_v19  ;;  %v1989_v22 = vpop.f32.mrb[3].mxu0  ;;  %v1890_v24 = vmul.f32 -1.442695, %v259_v19 }
  0xe8   :  { %2142 = vpow2.f32 %v1890_v24 }
  0xeb   :  { %v344_v42 = vpop.f32.mrb[4].mxu0 }
  0xec   :  { %v1996_v43 = vpop.f32.mrb[5].mxu0  ;;  %v2499_v48 = vadd.f32 %v1891_v47, %v344_v42 }
  0xed   :  { %v347_v44 = vpop.f32.mrb[6].mxu0 }
  0xee   :  { %v1997_v45 = vpop.f32.mrb[7].mxu0 }
  0xf0   :  { %v2141_v23 = vpop.eup %2140 }
  0xf1   :  { %272 = vrot.lane.b32.xlu0 %v2141_v23, %s2278_s19 }
  0xf2   :  { %v2143_v25 = vpop.eup %2142 }
  0xf3   :  { %v267_v26 = vadd.f32 1.0, %v2143_v25 }
  0xf5   :  { %2144 = vrcp.f32 %v267_v26 }
  0xff   :  { %v2145_v27 = vpop.eup %2144 }
 0x163   :  { %v273_v28 = vpop.permute.xlu0 %272 }
 0x164   :  { %v275_v29 = vmul.f32 %v2145_v27, %v273_v28 }
 0x166   :  { %2146 = vtanh.f32 %v275_v29 }
 0x170   :  { %v2147_v34 = vpop.eup %2146 }
 0x171   :  { %278 = vrot.lane.b32.xlu0 %v2147_v34, %s2279_s26 }
 0x1e3   :  { %v279_v37 = vpop.permute.xlu0 %278 }
 0x1e4   :  { %v281_v38 = vmul.f32 %v2145_v27, %v279_v37 }
 0x1e6   :  { %v2485_v39 = vpack.c.bf16 %v281_v38, %v281_v38 }
 0x1e8   :  { %v356_v40 = vshrl.u32 %v2485_v39, 16 }
 0x1ea   :  { %v358_v41 = vrot.slane %v356_v40, 3 }
 0x1ec   :  { %359 = vrot.lane.b32.xlu1 %v358_v41, %s2279_s26 }
 0x25e   :  { %v360_v46 = vpop.permute.xlu1 %359 }
 0x25f   :  { %2003 = vmatmul.mubr.msk.bf16.vlgmr.msra.gmra.mrb[8].mxu0 %vm220_vm0, %v360_v46 }
 0x260   :  { %2015 = vmatpush3.bf16.msra.mxu0 %v2458_v31  ;;  %2018 = vmatprep.mubr.msk.bf16.mxu0 %vm2277_vm1, %v2276_v13 }
 0x261   :  { %2016 = vmatprep.subr.bf16.mxu0 %v2276_v13 }
 0x264   :  { %2017 = vmatpush3.bf16.msra.mxu0 %v2473_v36 }
 0x265   :  { %2030 = vmatprep.subr.bf16.mxu0 %v2276_v13 }
 0x332   :  { %v410_v49 = vpop.f32.mrb[8].mxu0 }
 0x333   :  { %v416_v50 = vadd.f32 %v410_v49, %v2499_v48  ;;  %v2004_v51 = vpop.f32.mrb[9].mxu0 }
 0x334   :  { %v413_v52 = vpop.f32.mrb[10].mxu0 }
 0x335   :  { %2148 = vtanh.f32 %v416_v50  ;;  %v2005_v53 = vpop.f32.mrb[11].mxu0  ;;  %v1898_v55 = vmul.f32 -1.442695, %v416_v50 }
 0x337   :  { %2150 = vpow2.f32 %v1898_v55 }
 0x33f   :  { %v2149_v54 = vpop.eup %2148 }
 0x340   :  { %426 = vrot.lane.b32.xlu1 %v2149_v54, %s2279_s26 }
 0x341   :  { %v2151_v56 = vpop.eup %2150 }
 0x342   :  { %v420_v57 = vadd.f32 1.0, %v2151_v56 }
 0x344   :  { %2152 = vrcp.f32 %v420_v57 }
 0x34e   :  { %v2153_v58 = vpop.eup %2152 }
 0x34f   :  { %v424_v61 = vmul.f32 0.0, %v2153_v58 }
 0x3b2   :  { %v427_v59 = vpop.permute.xlu1 %426 }
 0x3b3   :  { %v429_v60 = vmul.f32 %v2153_v58, %v427_v59 }
 0x3b5   :  { %431 = vrot.lane.b32.xlu0 %v429_v60, %s2280_s5 }
 0x427   :  { %v432_v62 = vpop.permute.xlu0 %431 }
 0x428   :  { %v434_v63 = vadd.f32 %v432_v62, %v424_v61 }
 0x42a   :  { %2154 = vtanh.f32 %v434_v63  ;;  %v500_v32 = vrot.slane %v434_v63, 7 }
 0x434   :  { %v2155_v12 = vpop.eup %2154 }
 0x435   :  { %437 = vrot.lane.b32.xlu1 %v2155_v12, %s2279_s26 }
 0x4a7   :  { %v438_v14 = vpop.permute.xlu1 %437 }
 0x4a8   :  { %v2505_v15 = vmul.f32 %v2153_v58, %v438_v14 }
 0x4aa   :  { %v441_v16 = vpack.c.bf16 %v2505_v15, %v2505_v15 }
 0x4ac   :  { %443 = vrot.lane.b32.xlu0 %v441_v16, %s2280_s5 }
 0x51e   :  { %v444_v17 = vpop.permute.xlu0 %443 }
 0x51f   :  { %2011 = vmatmul.mubr.msk.bf16.vlgmr.msra.gmra.mrb[0].mxu1 %vm220_vm0, %v444_v17 }
 0x520   :  { %2023 = vmatpush3.bf16.msra.mxu1 %v2458_v31  ;;  %2026 = vmatprep.mubr.msk.bf16.mxu1 %vm2277_vm1, %v2276_v13 }
 0x521   :  { %2024 = vmatprep.subr.bf16.mxu1 %v2276_v13 }
 0x524   :  { %2025 = vmatpush3.bf16.msra.mxu1 %v2473_v36 }
 0x525   :  { %2038 = vmatprep.subr.bf16.mxu1 %v2276_v13 }
 0x5f2   :  { %v482_v18 = vpop.f32.mrb[0].mxu1 }
 0x5f3   :  { %v489_v19 = vrot.slane %v482_v18, 7  ;;  %v2012_v20 = vpop.f32.mrb[1].mxu1 }
 0x5f4   :  { %v485_v21 = vpop.f32.mrb[2].mxu1 }
 0x5f5   :  { %v491_v22 = vadd.f32 %v489_v19, %v2499_v48  ;;  %v2013_v23 = vpop.f32.mrb[3].mxu1 }
 0x5f7   :  { %2156 = vtanh.f32 %v491_v22  ;;  %v1900_v25 = vmul.f32 -1.442695, %v491_v22 }
 0x5f9   :  { %2158 = vpow2.f32 %v1900_v25 }
 0x601   :  { %v2157_v24 = vpop.eup %2156 }
 0x602   :  { %504 = vrot.lane.b32.xlu1 %v2157_v24, %s2279_s26 }
 0x603   :  { %v2159_v26 = vpop.eup %2158 }
 0x604   :  { %v495_v27 = vadd.f32 1.0, %v2159_v26 }
 0x606   :  { %2160 = vrcp.f32 %v495_v27 }
 0x610   :  { %v2161_v28 = vpop.eup %2160 }
 0x611   :  { %v502_v33 = vmul.f32 %v2161_v28, %v500_v32 }
 0x674   :  { %v505_v29 = vpop.permute.xlu1 %504 }
 0x675   :  { %v507_v30 = vmul.f32 %v2161_v28, %v505_v29 }
 0x677   :  { %509 = vrot.lane.b32.xlu0 %v507_v30, %s2280_s5 }
 0x6e9   :  { %v510_v34 = vpop.permute.xlu0 %509 }
 0x6ea   :  { %v512_v35 = vadd.f32 %v510_v34, %v502_v33 }
 0x6ec   :  { %2162 = vtanh.f32 %v512_v35  ;;  %v580_v58 = vrot.slane %v512_v35, 7 }
 0x6f6   :  { %v2163_v37 = vpop.eup %2162 }
 0x6f7   :  { %515 = vrot.lane.b32.xlu1 %v2163_v37, %s2279_s26 }
 0x769   :  { %v516_v38 = vpop.permute.xlu1 %515 }
 0x76a   :  { %v518_v40 = vmul.f32 %v2161_v28, %v516_v38 }
 0x76c   :  { %v519_v41 = vpack.c.bf16 %v518_v40, %v518_v40  ;;  %v999_v14 = vsel %vm998_vm2, %v2505_v15, %v518_v40  ;;  %vm1338_vm2 = vcmask 64512  }
 0x76e   :  { %v521_v42 = vshrl.u32 %v519_v41, 16 }
 0x770   :  { %523 = vrot.lane.b32.xlu0 %v521_v42, %s2280_s5 }
 0x7e2   :  { %v524_v43 = vpop.permute.xlu0 %523 }
 0x7e3   :  { %2019 = vmatmul.mubr.msk.bf16.vlgmr.msra.gmra.mrb[12].mxu0 %vm220_vm0, %v524_v43 }
 0x7e4   :  { %2031 = vmatpush3.bf16.msra.mxu0 %v2458_v31  ;;  %2034 = vmatprep.mubr.msk.bf16.mxu0 %vm2277_vm1, %v2276_v13 }
 0x7e5   :  { %2032 = vmatprep.subr.bf16.mxu0 %v2276_v13 }
 0x7e8   :  { %2033 = vmatpush3.bf16.msra.mxu0 %v2473_v36 }
 0x7e9   :  { %2046 = vmatprep.subr.bf16.mxu0 %v2276_v13 }
 0x8b6   :  { %v562_v44 = vpop.f32.mrb[12].mxu0 }
 0x8b7   :  { %v569_v45 = vrot.slane %v562_v44, 6  ;;  %v2020_v46 = vpop.f32.mrb[13].mxu0 }
 0x8b8   :  { %v565_v47 = vpop.f32.mrb[14].mxu0 }
 0x8b9   :  { %v571_v49 = vadd.f32 %v569_v45, %v2499_v48  ;;  %v2021_v50 = vpop.f32.mrb[15].mxu0 }
 0x8bb   :  { %2164 = vtanh.f32 %v571_v49  ;;  %v1902_v52 = vmul.f32 -1.442695, %v571_v49 }
 0x8bd   :  { %2166 = vpow2.f32 %v1902_v52 }
 0x8c5   :  { %v2165_v51 = vpop.eup %2164 }
 0x8c6   :  { %584 = vrot.lane.b32.xlu1 %v2165_v51, %s2279_s26 }
 0x8c7   :  { %v2167_v53 = vpop.eup %2166 }
 0x8c8   :  { %v575_v54 = vadd.f32 1.0, %v2167_v53 }
 0x8ca   :  { %2168 = vrcp.f32 %v575_v54 }
 0x8d4   :  { %v2169_v55 = vpop.eup %2168 }
 0x8d5   :  { %v582_v59 = vmul.f32 %v2169_v55, %v580_v58 }
 0x938   :  { %v585_v56 = vpop.permute.xlu1 %584 }
 0x939   :  { %v587_v57 = vmul.f32 %v2169_v55, %v585_v56 }
 0x93b   :  { %589 = vrot.lane.b32.xlu0 %v587_v57, %s2280_s5 }
 0x9ad   :  { %v590_v60 = vpop.permute.xlu0 %589 }
 0x9ae   :  { %v592_v61 = vadd.f32 %v590_v60, %v582_v59 }
 0x9b0   :  { %2170 = vtanh.f32 %v592_v61  ;;  %v659_v33 = vrot.slane %v592_v61, 7 }
 0x9ba   :  { %v2171_v62 = vpop.eup %2170 }
 0x9bb   :  { %595 = vrot.lane.b32.xlu1 %v2171_v62, %s2279_s26 }
 0xa2d   :  { %v596_v63 = vpop.permute.xlu1 %595 }
 0xa2e   :  { %v598_v12 = vmul.f32 %v2169_v55, %v596_v63 }
 0xa30   :  { %v599_v16 = vpack.c.bf16 %v598_v12, %v598_v12  ;;  %v1001_v17 = vsel %vm1000_vm3, %v999_v14, %v598_v12 }
 0xa32   :  { %v601_v18 = vrot.slane %v599_v16, 1 }
 0xa34   :  { %602 = vrot.lane.b32.xlu0 %v601_v18, %s2280_s5 }
 0xaa6   :  { %v603_v19 = vpop.permute.xlu0 %602 }
 0xaa7   :  { %2027 = vmatmul.mubr.msk.bf16.vlgmr.msra.gmra.mrb[4].mxu1 %vm220_vm0, %v603_v19 }
 0xaa8   :  { %2039 = vmatpush3.bf16.msra.mxu1 %v2458_v31  ;;  %2042 = vmatprep.mubr.msk.bf16.mxu1 %vm2277_vm1, %v2276_v13 }
 0xaa9   :  { %2040 = vmatprep.subr.bf16.mxu1 %v2276_v13 }
 0xaac   :  { %2041 = vmatpush3.bf16.msra.mxu1 %v2473_v36 }
 0xaad   :  { %2054 = vmatprep.subr.bf16.mxu1 %v2276_v13 }
 0xb7a   :  { %v641_v15 = vpop.f32.mrb[4].mxu1 }
 0xb7b   :  { %v648_v20 = vrot.slane %v641_v15, 5  ;;  %v2028_v21 = vpop.f32.mrb[5].mxu1 }
 0xb7c   :  { %v644_v22 = vpop.f32.mrb[6].mxu1 }
 0xb7d   :  { %v650_v23 = vadd.f32 %v648_v20, %v2499_v48  ;;  %v2029_v24 = vpop.f32.mrb[7].mxu1 }
 0xb7f   :  { %2172 = vtanh.f32 %v650_v23  ;;  %v1904_v26 = vmul.f32 -1.442695, %v650_v23 }
 0xb81   :  { %2174 = vpow2.f32 %v1904_v26 }
 0xb89   :  { %v2173_v25 = vpop.eup %2172 }
 0xb8a   :  { %663 = vrot.lane.b32.xlu1 %v2173_v25, %s2279_s26 }
 0xb8b   :  { %v2175_v27 = vpop.eup %2174 }
 0xb8c   :  { %v654_v28 = vadd.f32 1.0, %v2175_v27 }
 0xb8e   :  { %2176 = vrcp.f32 %v654_v28 }
 0xb98   :  { %v2177_v29 = vpop.eup %2176 }
 0xb99   :  { %v661_v34 = vmul.f32 %v2177_v29, %v659_v33 }
 0xbfc   :  { %v664_v30 = vpop.permute.xlu1 %663 }
 0xbfd   :  { %v666_v32 = vmul.f32 %v2177_v29, %v664_v30 }
 0xbff   :  { %668 = vrot.lane.b32.xlu0 %v666_v32, %s2280_s5 }
 0xc71   :  { %v669_v35 = vpop.permute.xlu0 %668 }
 0xc72   :  { %v671_v37 = vadd.f32 %v669_v35, %v661_v34 }
 0xc74   :  { %2178 = vtanh.f32 %v671_v37  ;;  %v740_v61 = vrot.slane %v671_v37, 7 }
 0xc7e   :  { %v2179_v38 = vpop.eup %2178 }
 0xc7f   :  { %674 = vrot.lane.b32.xlu1 %v2179_v38, %s2279_s26 }
 0xcf1   :  { %v675_v40 = vpop.permute.xlu1 %674 }
 0xcf2   :  { %v677_v41 = vmul.f32 %v2177_v29, %v675_v40 }
 0xcf4   :  { %v678_v42 = vpack.c.bf16 %v677_v41, %v677_v41  ;;  %v1003_v43 = vsel %vm1002_vm4, %v1001_v17, %v677_v41 }
 0xcf6   :  { %v680_v44 = vshrl.u32 %v678_v42, 16 }
 0xcf8   :  { %v682_v45 = vrot.slane %v680_v44, 1 }
 0xcfa   :  { %683 = vrot.lane.b32.xlu0 %v682_v45, %s2280_s5 }
 0xd6c   :  { %v684_v46 = vpop.permute.xlu0 %683 }
 0xd6d   :  { %2035 = vmatmul.mubr.msk.bf16.vlgmr.msra.gmra.mrb[16].mxu0 %vm220_vm0, %v684_v46 }
 0xd6e   :  { %2047 = vmatpush3.bf16.msra.mxu0 %v2458_v31  ;;  %2050 = vmatprep.mubr.msk.bf16.mxu0 %vm2277_vm1, %v2276_v13 }
 0xd6f   :  { %2048 = vmatprep.subr.bf16.mxu0 %v2276_v13 }
 0xd72   :  { %2049 = vmatpush3.bf16.msra.mxu0 %v2473_v36 }
 0xd73   :  { %2062 = vmatprep.subr.bf16.mxu0 %v2276_v13 }
 0xe40   :  { %v722_v47 = vpop.f32.mrb[16].mxu0 }
 0xe41   :  { %v729_v49 = vrot.slane %v722_v47, 4  ;;  %v2036_v50 = vpop.f32.mrb[17].mxu0 }
 0xe42   :  { %v725_v51 = vpop.f32.mrb[18].mxu0 }
 0xe43   :  { %v731_v52 = vadd.f32 %v729_v49, %v2499_v48  ;;  %v2037_v53 = vpop.f32.mrb[19].mxu0 }
 0xe45   :  { %2180 = vtanh.f32 %v731_v52  ;;  %v1906_v55 = vmul.f32 -1.442695, %v731_v52 }
 0xe47   :  { %2182 = vpow2.f32 %v1906_v55 }
 0xe4f   :  { %v2181_v54 = vpop.eup %2180 }
 0xe50   :  { %744 = vrot.lane.b32.xlu1 %v2181_v54, %s2279_s26 }
 0xe51   :  { %v2183_v56 = vpop.eup %2182 }
 0xe52   :  { %v735_v57 = vadd.f32 1.0, %v2183_v56 }
 0xe54   :  { %2184 = vrcp.f32 %v735_v57 }
 0xe5e   :  { %v2185_v58 = vpop.eup %2184 }
 0xe5f   :  { %v742_v62 = vmul.f32 %v2185_v58, %v740_v61 }
 0xec2   :  { %v745_v59 = vpop.permute.xlu1 %744 }
 0xec3   :  { %v747_v60 = vmul.f32 %v2185_v58, %v745_v59 }
 0xec5   :  { %749 = vrot.lane.b32.xlu0 %v747_v60, %s2280_s5 }
 0xf37   :  { %v750_v63 = vpop.permute.xlu0 %749 }
 0xf38   :  { %v752_v12 = vadd.f32 %v750_v63, %v742_v62 }
 0xf3a   :  { %2186 = vtanh.f32 %v752_v12  ;;  %v819_v33 = vrot.slane %v752_v12, 7 }
 0xf44   :  { %v2187_v14 = vpop.eup %2186 }
 0xf45   :  { %755 = vrot.lane.b32.xlu1 %v2187_v14, %s2279_s26 }
 0xfb7   :  { %v756_v16 = vpop.permute.xlu1 %755 }
 0xfb8   :  { %v758_v17 = vmul.f32 %v2185_v58, %v756_v16 }
 0xfba   :  { %v759_v18 = vpack.c.bf16 %v758_v17, %v758_v17  ;;  %v1005_v19 = vsel %vm1004_vm5, %v1003_v43, %v758_v17 }
 0xfbc   :  { %v761_v15 = vrot.slane %v759_v18, 2 }
 0xfbe   :  { %762 = vrot.lane.b32.xlu0 %v761_v15, %s2280_s5 }
0x1030   :  { %v763_v20 = vpop.permute.xlu0 %762 }
0x1031   :  { %2043 = vmatmul.mubr.msk.bf16.vlgmr.msra.gmra.mrb[8].mxu1 %vm220_vm0, %v763_v20 }
0x1032   :  { %2055 = vmatpush3.bf16.msra.mxu1 %v2458_v31  ;;  %2058 = vmatprep.mubr.msk.bf16.mxu1 %vm2277_vm1, %v2276_v13 }
0x1033   :  { %2056 = vmatprep.subr.bf16.mxu1 %v2276_v13 }
0x1036   :  { %2057 = vmatpush3.bf16.msra.mxu1 %v2473_v36 }
0x1037   :  { %2070 = vmatprep.subr.bf16.mxu1 %v2276_v13 }
0x1104   :  { %v801_v21 = vpop.f32.mrb[8].mxu1 }
0x1105   :  { %v808_v22 = vrot.slane %v801_v21, 3  ;;  %v2044_v23 = vpop.f32.mrb[9].mxu1 }
0x1106   :  { %v804_v24 = vpop.f32.mrb[10].mxu1 }
0x1107   :  { %v810_v25 = vadd.f32 %v808_v22, %v2499_v48  ;;  %v2045_v26 = vpop.f32.mrb[11].mxu1 }
0x1109   :  { %2188 = vtanh.f32 %v810_v25  ;;  %v1908_v31 = vmul.f32 -1.442695, %v810_v25 }
0x110b   :  { %2190 = vpow2.f32 %v1908_v31 }
0x1113   :  { %v2189_v27 = vpop.eup %2188 }
0x1114   :  { %823 = vrot.lane.b32.xlu1 %v2189_v27, %s2279_s26 }
0x1115   :  { %v2191_v28 = vpop.eup %2190 }
0x1116   :  { %v814_v29 = vadd.f32 1.0, %v2191_v28 }
0x1118   :  { %2192 = vrcp.f32 %v814_v29 }
0x1122   :  { %v2193_v30 = vpop.eup %2192 }
0x1123   :  { %v821_v34 = vmul.f32 %v2193_v30, %v819_v33  ;;  %v2136_v33 = vld [vmem:[%s2785_s7] sm:$0xff]  }
0x1186   :  { %v824_v36 = vpop.permute.xlu1 %823 }
0x1187   :  { %v826_v32 = vmul.f32 %v2193_v30, %v824_v36 }
0x1189   :  { %828 = vrot.lane.b32.xlu0 %v826_v32, %s2280_s5 }
0x11fb   :  { %v829_v35 = vpop.permute.xlu0 %828 }
0x11fc   :  { %v831_v37 = vadd.f32 %v829_v35, %v821_v34 }
0x11fe   :  { %2194 = vtanh.f32 %v831_v37  ;;  %v900_v61 = vrot.slane %v831_v37, 7  ;;  %v2137_v37 = vld [vmem:[%s2785_s7 + $0x8] sm:$0xff]  }
0x1208   :  { %v2195_v38 = vpop.eup %2194 }
0x1209   :  { %834 = vrot.lane.b32.xlu1 %v2195_v38, %s2279_s26 }
0x127b   :  { %v835_v40 = vpop.permute.xlu1 %834 }
0x127c   :  { %v837_v41 = vmul.f32 %v2193_v30, %v835_v40  ;;  %v2138_v40 = vld [vmem:[%s2786_s8] sm:$0xff]  }
0x127e   :  { %v838_v42 = vpack.c.bf16 %v837_v41, %v837_v41  ;;  %v1007_v43 = vsel %vm1006_vm6, %v1005_v19, %v837_v41  ;;  %v2139_v41 = vld [vmem:[%s2786_s8 + $0x8] sm:$0xff]  }
0x1280   :  { %v840_v44 = vshrl.u32 %v838_v42, 16 }
0x1282   :  { %v842_v45 = vrot.slane %v840_v44, 2 }
0x1284   :  { %843 = vrot.lane.b32.xlu0 %v842_v45, %s2280_s5 }
0x12f6   :  { %v844_v46 = vpop.permute.xlu0 %843 }
0x12f7   :  { %2051 = vmatmul.mubr.msk.bf16.vlgmr.msra.gmra.mrb[20].mxu0 %vm220_vm0, %v844_v46 }
0x12f8   :  { %2066 = vmatprep.mubr.msk.bf16.mxu0 %vm2277_vm1, %v2276_v13  ;;  %2063 = vmatpush3.bf16.msra.mxu0 %v2138_v40 }
0x12f9   :  { %2064 = vmatprep.subr.bf16.mxu0 %v2276_v13 }
0x12fc   :  { %2065 = vmatpush3.bf16.msra.mxu0 %v2139_v41 }
0x12fd   :  { %2078 = vmatprep.subr.bf16.mxu0 %v2276_v13 }
0x13ca   :  { %v882_v47 = vpop.f32.mrb[20].mxu0 }
0x13cb   :  { %v889_v49 = vrot.slane %v882_v47, 2  ;;  %v2052_v50 = vpop.f32.mrb[21].mxu0 }
0x13cc   :  { %v885_v51 = vpop.f32.mrb[22].mxu0 }
0x13cd   :  { %v891_v52 = vadd.f32 %v889_v49, %v2499_v48  ;;  %v2053_v53 = vpop.f32.mrb[23].mxu0 }
0x13cf   :  { %2196 = vtanh.f32 %v891_v52  ;;  %v1910_v55 = vmul.f32 -1.442695, %v891_v52 }
0x13d1   :  { %2198 = vpow2.f32 %v1910_v55 }
0x13d9   :  { %v2197_v54 = vpop.eup %2196 }
0x13da   :  { %904 = vrot.lane.b32.xlu1 %v2197_v54, %s2279_s26  ;;  %v2281_v54 = vmov 1966171168  }
0x13db   :  { %v2199_v56 = vpop.eup %2198  ;;  %v1147_v55 = vunpack.c.l.s4 %v2281_v54 }
0x13dc   :  { %v895_v57 = vadd.f32 1.0, %v2199_v56  ;;  %v1149_v56 = vlaneseq }
0x13de   :  { %2200 = vrcp.f32 %v895_v57  ;;  %v1148_v57 = vunpack.c.0.s8 %v1147_v55 }
0x13e8   :  { %v2201_v58 = vpop.eup %2200 }
0x13e9   :  { %v902_v62 = vmul.f32 %v2201_v58, %v900_v61 }
0x144c   :  { %v905_v59 = vpop.permute.xlu1 %904 }
0x144d   :  { %v907_v60 = vmul.f32 %v2201_v58, %v905_v59 }
0x144f   :  { %909 = vrot.lane.b32.xlu0 %v907_v60, %s2280_s5 }
0x14c1   :  { %v910_v63 = vpop.permute.xlu0 %909 }
0x14c2   :  { %v912_v12 = vadd.f32 %v910_v63, %v902_v62 }
0x14c4   :  { %2202 = vtanh.f32 %v912_v12 }
0x14ce   :  { %v2203_v14 = vpop.eup %2202 }
0x14cf   :  { %915 = vrot.lane.b32.xlu1 %v2203_v14, %s2279_s26 }
0x1541   :  { %v916_v16 = vpop.permute.xlu1 %915 }
0x1542   :  { %v918_v17 = vmul.f32 %v2201_v58, %v916_v16  ;;  %v2614_v58 = vshrl.u32 %v1149_v56, 7  ;;  %v1916_v16 = vld [vmem:[%s2787_s9] ss:$0 sm:$0xff] }
0x1544   :  { %v919_v18 = vpack.c.bf16 %v918_v17, %v918_v17  ;;  %v1009_v19 = vsel %vm1008_vm7, %v1007_v43, %v918_v17  ;;  %v1151_v59 = vsub.s32 %v1148_v57, %v2614_v58 }
0x1546   :  { %v921_v15 = vrot.slane %v919_v18, 3 }
0x1548   :  { %922 = vrot.lane.b32.xlu0 %v921_v15, %s2280_s5 }
0x15ba   :  { %v923_v20 = vpop.permute.xlu0 %922 }
0x15bb   :  { %2059 = vmatmul.mubr.msk.bf16.vlgmr.msra.gmra.mrb[12].mxu1 %vm220_vm0, %v923_v20 }
0x15bc   :  { %2074 = vmatprep.mubr.msk.bf16.mxu1 %vm2277_vm1, %v2276_v13  ;;  %2071 = vmatpush3.bf16.msra.mxu1 %v2136_v33 }
0x15bd   :  { %2072 = vmatprep.subr.bf16.mxu1 %v2276_v13 }
0x15c0   :  { %2073 = vmatpush3.bf16.msra.mxu1 %v2137_v37 }
0x168e   :  { %v961_v21 = vpop.f32.mrb[12].mxu1 }
0x168f   :  { %v968_v22 = vrot.slane %v961_v21, 1  ;;  %v2060_v23 = vpop.f32.mrb[13].mxu1 }
0x1690   :  { %v964_v24 = vpop.f32.mrb[14].mxu1 }
0x1691   :  { %v970_v25 = vadd.f32 %v968_v22, %v2499_v48  ;;  %v2061_v26 = vpop.f32.mrb[15].mxu1  ;;  %v979_v48 = vrot.slane %v912_v12, 7  ;;  %v2618_v12 = vsub.s32 0, %v2614_v58 }
0x1693   :  { %2204 = vtanh.f32 %v970_v25  ;;  %v1912_v31 = vmul.f32 -1.442695, %v970_v25 }
0x1695   :  { %2206 = vpow2.f32 %v1912_v31 }
0x169d   :  { %v2205_v27 = vpop.eup %2204 }
0x169e   :  { %983 = vrot.lane.b32.xlu1 %v2205_v27, %s2279_s26 }
0x169f   :  { %v2207_v28 = vpop.eup %2206 }
0x16a0   :  { %v974_v29 = vadd.f32 1.0, %v2207_v28 }
0x16a2   :  { %2208 = vrcp.f32 %v974_v29 }
0x16ac   :  { %v2209_v30 = vpop.eup %2208 }
0x16ad   :  { %v981_v34 = vmul.f32 %v2209_v30, %v979_v48 }
0x1710   :  { %v984_v36 = vpop.permute.xlu1 %983 }
0x1711   :  { %v986_v32 = vmul.f32 %v2209_v30, %v984_v36 }
0x1713   :  { %988 = vrot.lane.b32.xlu0 %v986_v32, %s2280_s5 }
0x1785   :  { %v989_v35 = vpop.permute.xlu0 %988 }
0x1786   :  { %v991_v38 = vadd.f32 %v989_v35, %v981_v34 }
0x1788   :  { %2210 = vtanh.f32 %v991_v38 }
0x1792   :  { %v2211_v42 = vpop.eup %2210 }
0x1793   :  { %994 = vrot.lane.b32.xlu1 %v2211_v42, %s2279_s26 }
0x1797   :  { %1087 = vrot.lane.b32.xlu1 %v2485_v39, %s2279_s26 }
0x1805   :  { %v995_v43 = vpop.permute.xlu1 %994 }
0x1806   :  { %v997_v44 = vmul.f32 %v2209_v30, %v995_v43 }
0x1808   :  { %v1011_v45 = vsel %vm1010_vm8, %v1009_v19, %v997_v44 }
0x1809   :  { %v1088_v46 = vpop.permute.xlu1 %1087  ;;  %v1016_v47 = vpack.c.bf16 %v1011_v45, %v1011_v45  ;;  %v1920_v45 = vld [vmem:[%s2788_s10] ss:$0 sm:$0xff] }
0x180a   :  { %2075 = vmatmul.mubr.msk.bf16.vlgmr.msra.gmra.mrb[16].mxu1 %vm220_vm0, %v1088_v46  ;;  %v1623_v50 = vsel %vm1004_vm5, %v1088_v46, 0 }
0x180b   :  { %1022 = vrot.lane.b32.xlu0 %v1016_v47, %s2280_s5 }
0x187d   :  { %v2606_v49 = vpop.permute.xlu0 %1022 }
0x187e   :  { %2067 = vmatmul.mubr.msk.bf16.vlgmr.msra.gmra.mrb[24].mxu0 %vm220_vm0, %v2606_v49 }
0x187f   :  { %2079 = vmatpush3.bf16.msra.mxu0 %v1623_v50  ;;  %2080 = vmatprep.mubr.msk.bf16.mxu0 %vm2277_vm1, %v2276_v13 }
0x18dd   :  { %v1138_v39 = vpop.f32.mrb[16].mxu1 }
0x18de   :  { %v2076_v51 = vpop.f32.mrb[17].mxu1  ;;  %v1139_v24 = vadd.f32 %v1916_v16, %v1138_v39  ;;  %v1290_v16 = vand.u32 127, %v1149_v56 }
0x18df   :  { %v1141_v52 = vpop.f32.mrb[18].mxu1 }
0x18e0   :  { %v2077_v53 = vpop.f32.mrb[19].mxu1 }
0x1951   :  { %v1073_v60 = vpop.f32.mrb[24].mxu0 }
0x1952   :  { %v1145_v61 = vcombine.high %v1073_v60, %v1073_v60  ;;  %v1152_v62 = vrot.slane %v1073_v60, %v1151_v59  ;;  %v2068_v63 = vpop.f32.mrb[25].mxu0 }
0x1953   :  { %v1076_v14 = vpop.f32.mrb[26].mxu0 }
0x1954   :  { %v1159_v17 = vrot.slane %v1145_v61, %v1151_v59  ;;  %v1160_v18 = vcombine.high %v1152_v62, %v1152_v62  ;;  %v1168_v19 = vrot.slane %v1152_v62, %v1151_v59  ;;  %v2069_v15 = vpop.f32.mrb[27].mxu0 }
0x1956   :  { %v1161_v20 = vcombine.high %v1159_v17, %v1159_v17  ;;  %v1175_v21 = vrot.slane %v1159_v17, %v1151_v59  ;;  %v1182_v22 = vrot.slane %v1160_v18, %v1151_v59  ;;  %v1190_v23 = vcombine.high %v1168_v19, %v1168_v19 }
0x1957   :  { %v1197_v25 = vrot.slane %v1168_v19, %v2618_v12  ;;  %v2636_v18 = vsub.s32 %v1290_v16, %v2614_v58 }
0x1958   :  { %v1189_v26 = vrot.slane %v1161_v20, %v1151_v59  ;;  %v1191_v27 = vcombine.high %v1175_v21, %v1175_v21  ;;  %v1192_v31 = vcombine.high %v1182_v22, %v1182_v22  ;;  %v1201_v28 = vrot.slane %v1182_v22, %v2618_v12 }
0x1959   :  { %v1205_v29 = vrot.slane %v1190_v23, %v2618_v12  ;;  %v1213_v30 = vrot.slane %v1175_v21, %v2618_v12  ;;  %v1234_v36 = vadd.f32 %v1197_v25, %v1139_v24 }
0x195a   :  { %v1193_v32 = vcombine.high %v1189_v26, %v1189_v26  ;;  %v1209_v33 = vrot.slane %v1192_v31, %v2618_v12  ;;  %v1217_v48 = vrot.slane %v1189_v26, %v2618_v12  ;;  %v1221_v34 = vrot.slane %v1191_v27, %v2618_v12 }
0x195b   :  { %v1235_v35 = vadd.f32 %v1201_v28, %v1139_v24  ;;  %v1236_v37 = vadd.f32 %v1205_v29, %v1139_v24  ;;  %v1238_v38 = vadd.f32 %v1213_v30, %v1139_v24  ;;  %2212 = vtanh.f32 %v1234_v36 }
0x195c   :  { %v1225_v40 = vrot.slane %v1193_v32, %v2618_v12  ;;  %v1237_v41 = vadd.f32 %v1209_v33, %v1139_v24  ;;  %v1239_v42 = vadd.f32 %v1217_v48, %v1139_v24  ;;  %v1240_v43 = vadd.f32 %v1221_v34, %v1139_v24 }
0x195d   :  { %2214 = vtanh.f32 %v1235_v35 }
0x195e   :  { %2216 = vtanh.f32 %v1236_v37  ;;  %v1241_v44 = vadd.f32 %v1225_v40, %v1139_v24  ;;  %v2282_v40 = vmov 0  }
0x195f   :  { %2218 = vtanh.f32 %v1238_v38  ;;  %2129 = vset.pattern.permute.xlu1 %v2282_v40  ;;  %2128 = vset.pattern.permute.xlu0 %v2282_v40 }
0x1960   :  { %2220 = vtanh.f32 %v1237_v41  ;;  %v1349_v41 = vsub.s32 1, %v2614_v58 }
0x1961   :  { %2222 = vtanh.f32 %v1240_v43  ;;  %v1357_v43 = vsub.s32 3, %v2614_v58 }
0x1962   :  { %2224 = vtanh.f32 %v1239_v42  ;;  %v1353_v42 = vsub.s32 2, %v2614_v58 }
0x1963   :  { %2226 = vtanh.f32 %v1241_v44 }
0x1965   :  { %v2213_v46 = vpop.eup %2212 }
0x1966   :  { %v1257_v47 = vmul.f32 %v2213_v46, %v1920_v45 }
0x1967   :  { %v2215_v50 = vpop.eup %2214 }
0x1968   :  { %v2217_v39 = vpop.eup %2216  ;;  %1265 = vadd.xlane.f32.xlu0 %v1257_v47  ;;  %v1258_v51 = vmul.f32 %v2215_v50, %v1920_v45 }
0x1969   :  { %v2219_v52 = vpop.eup %2218  ;;  %v1259_v53 = vmul.f32 %v2217_v39, %v1920_v45 }
0x196a   :  { %1267 = vadd.xlane.f32.xlu1 %v1258_v51  ;;  %v2221_v54 = vpop.eup %2220  ;;  %v1261_v55 = vmul.f32 %v2219_v52, %v1920_v45  ;;  %v1361_v51 = vsub.s32 4, %v2614_v58 }
0x196b   :  { %v2223_v57 = vpop.eup %2222  ;;  %v1260_v59 = vmul.f32 %v2221_v54, %v1920_v45 }
0x196c   :  { %1269 = vadd.xlane.f32.xlu0 %v1259_v53  ;;  %v2225_v60 = vpop.eup %2224  ;;  %v1263_v61 = vmul.f32 %v2223_v57, %v1920_v45  ;;  %v1365_v57 = vsub.s32 5, %v2614_v58 }
0x196d   :  { %v1262_v62 = vmul.f32 %v2225_v60, %v1920_v45  ;;  %v2227_v63 = vpop.eup %2226 }
0x196e   :  { %1273 = vadd.xlane.f32.xlu1 %v1261_v55  ;;  %v1264_v14 = vmul.f32 %v2227_v63, %v1920_v45 }
0x1970   :  { %1271 = vadd.xlane.f32.xlu0 %v1260_v59 }
0x1972   :  { %1277 = vadd.xlane.f32.xlu1 %v1263_v61 }
0x1974   :  { %1275 = vadd.xlane.f32.xlu0 %v1262_v62  ;;  %v1369_v62 = vsub.s32 6, %v2614_v58 }
0x1978   :  { %1279 = vadd.xlane.f32.xlu0 %v1264_v14 }
0x19f5   :  { %v1266_v17 = vpop.xlane.xlu0 %1265 }
0x19f6   :  { %v1294_v21 = vrot.slane %v1266_v17, %v2636_v18 }
0x19f7   :  { %v1268_v19 = vpop.xlane.xlu1 %1267 }
0x19f8   :  { %v1298_v15 = vrot.slane %v1268_v19, %v2636_v18 }
0x19f9   :  { %v1270_v20 = vpop.xlane.xlu0 %1269 }
0x19fa   :  { %v1302_v22 = vrot.slane %v1270_v20, %v2636_v18  ;;  %v1324_v23 = vsel %vm1323_vm9, %v1298_v15, %v1294_v21 }
0x19fb   :  { %v1274_v24 = vpop.xlane.xlu1 %1273 }
0x19fc   :  { %v1326_v26 = vsel %vm1325_vm10, %v1302_v22, %v1324_v23  ;;  %v1310_v31 = vrot.slane %v1274_v24, %v2636_v18 }
0x19fd   :  { %v1272_v25 = vpop.xlane.xlu0 %1271 }
0x19fe   :  { %v1306_v56 = vrot.slane %v1272_v25, %v2636_v18 }
0x19ff   :  { %v1278_v29 = vpop.xlane.xlu1 %1277 }
0x1a00   :  { %v1328_v27 = vsel %vm1327_vm11, %v1306_v56, %v1326_v26  ;;  %v1318_v33 = vrot.slane %v1278_v29, %v2636_v18 }
0x1a01   :  { %v1276_v28 = vpop.xlane.xlu0 %1275  ;;  %v1330_v36 = vsel %vm1329_vm12, %v1310_v31, %v1328_v27 }
0x1a02   :  { %v1314_v30 = vrot.slane %v1276_v28, %v2636_v18 }
0x1a04   :  { %v1332_v32 = vsel %vm1331_vm13, %v1314_v30, %v1330_v36 }
0x1a05   :  { %v1280_v48 = vpop.xlane.xlu0 %1279  ;;  %v1334_v35 = vsel %vm1333_vm14, %v1318_v33, %v1332_v32 }
0x1a06   :  { %v1322_v34 = vrot.slane %v1280_v48, %v2636_v18 }
0x1a08   :  { %v1336_v37 = vsel %vm1335_vm15, %v1322_v34, %v1334_v35 }
0x1a09   :  { %v1339_v38 = vsel %vm1338_vm2, %v1336_v37, -inf }
0x1a0a   :  { %1340 = vmax.xlane.f32.xlu1 %v1339_v38 }
0x1a97   :  { %v1341_v44 = vpop.xlane.xlu1 %1340 }
0x1a98   :  { %v1346_v45 = vrot.slane %v1341_v44, %v2618_v12  ;;  %v1350_v46 = vrot.slane %v1341_v44, %v1349_v41  ;;  %v1354_v47 = vrot.slane %v1341_v44, %v1353_v42  ;;  %v1358_v52 = vrot.slane %v1341_v44, %v1357_v43 }
0x1a99   :  { %v1362_v59 = vrot.slane %v1341_v44, %v1361_v51  ;;  %v1366_v63 = vrot.slane %v1341_v44, %v1365_v57 }
0x1a9a   :  { %v1383_v50 = vsub.f32 %v1266_v17, %v1346_v45  ;;  %v1384_v39 = vsub.f32 %v1268_v19, %v1350_v46  ;;  %v1385_v53 = vsub.f32 %v1270_v20, %v1354_v47  ;;  %v1386_v60 = vsub.f32 %v1272_v25, %v1358_v52 }
0x1a9b   :  { %v1387_v14 = vsub.f32 %v1274_v24, %v1362_v59  ;;  %v1373_v17 = vsub.s32 7, %v2614_v58  ;;  %v1370_v19 = vrot.slane %v1341_v44, %v1369_v62  ;;  %v1388_v15 = vsub.f32 %v1276_v28, %v1366_v63 }
0x1a9c   :  { %v1391_v54 = vmul.f32 1.442695, %v1383_v50  ;;  %v1393_v55 = vmul.f32 1.442695, %v1384_v39  ;;  %v1395_v61 = vmul.f32 1.442695, %v1385_v53 }
0x1a9d   :  { %v1397_v16 = vmul.f32 1.442695, %v1386_v60  ;;  %v1399_v20 = vmul.f32 1.442695, %v1387_v14  ;;  %v1374_v23 = vrot.slane %v1341_v44, %v1373_v17  ;;  %v1389_v25 = vsub.f32 %v1278_v29, %v1370_v19 }
0x1a9e   :  { %2228 = vpow2.f32 %v1391_v54  ;;  %v1401_v24 = vmul.f32 1.442695, %v1388_v15 }
0x1a9f   :  { %2230 = vpow2.f32 %v1393_v55  ;;  %v1390_v26 = vsub.f32 %v1280_v48, %v1374_v23  ;;  %v1403_v27 = vmul.f32 1.442695, %v1389_v25 }
0x1aa0   :  { %2232 = vpow2.f32 %v1395_v61 }
0x1aa1   :  { %2234 = vpow2.f32 %v1397_v16  ;;  %v1405_v28 = vmul.f32 1.442695, %v1390_v26 }
0x1aa2   :  { %2236 = vpow2.f32 %v1399_v20 }
0x1aa3   :  { %2238 = vpow2.f32 %v1401_v24 }
0x1aa4   :  { %2240 = vpow2.f32 %v1403_v27 }
0x1aa5   :  { %2242 = vpow2.f32 %v1405_v28 }
0x1aa8   :  { %v2229_v21 = vpop.eup %2228 }
0x1aa9   :  { %v2231_v22 = vpop.eup %2230  ;;  %1416 = vperm.xlu0 %2128, %v2229_v21  }
0x1aaa   :  { %1419 = vperm.xlu1 %2129, %v2231_v22   ;;  %v2233_v56 = vpop.eup %2232 }
0x1aab   :  { %v2235_v31 = vpop.eup %2234 }
0x1aac   :  { %v2237_v30 = vpop.eup %2236 }
0x1aad   :  { %v2239_v36 = vpop.eup %2238 }
0x1aae   :  { %1422 = vperm.xlu1 %2129, %v2233_v56   ;;  %v2241_v32 = vpop.eup %2240 }
0x1aaf   :  { %v2676_v33 = vpop.eup %2242 }
0x1ab2   :  { %1425 = vperm.xlu1 %2129, %v2235_v31  }
0x1ab6   :  { %1428 = vperm.xlu1 %2129, %v2237_v30  }
0x1aba   :  { %1431 = vperm.xlu1 %2129, %v2239_v36  }
0x1abe   :  { %1434 = vperm.xlu1 %2129, %v2241_v32  }
0x1ac2   :  { %1437 = vperm.xlu1 %2129, %v2676_v33  }
0x1b28   :  { %v1417_v37 = vpop.permute.xlu0 %1416 }
0x1b29   :  { %v1420_v29 = vpop.permute.xlu1 %1419  ;;  %v1442_v44 = vrot.slane %v1417_v37, %v2636_v18 }
0x1b2a   :  { %v1446_v40 = vrot.slane %v1420_v29, %v2636_v18 }
0x1b2c   :  { %v1471_v39 = vsel %vm1323_vm9, %v1446_v40, %v1442_v44 }
0x1b2d   :  { %v1423_v34 = vpop.permute.xlu1 %1422 }
0x1b2e   :  { %v1450_v45 = vrot.slane %v1423_v34, %v2636_v18 }
0x1b30   :  { %v1472_v53 = vsel %vm1325_vm10, %v1450_v45, %v1471_v39 }
0x1b31   :  { %v1426_v48 = vpop.permute.xlu1 %1425 }
0x1b32   :  { %v1454_v46 = vrot.slane %v1426_v48, %v2636_v18 }
0x1b34   :  { %v1473_v55 = vsel %vm1327_vm11, %v1454_v46, %v1472_v53 }
0x1b35   :  { %v1429_v35 = vpop.permute.xlu1 %1428 }
0x1b36   :  { %v1458_v47 = vrot.slane %v1429_v35, %v2636_v18 }
0x1b38   :  { %v1474_v59 = vsel %vm1329_vm12, %v1458_v47, %v1473_v55 }
0x1b39   :  { %v1432_v38 = vpop.permute.xlu1 %1431 }
0x1b3a   :  { %v1462_v52 = vrot.slane %v1432_v38, %v2636_v18 }
0x1b3c   :  { %v1475_v61 = vsel %vm1331_vm13, %v1462_v52, %v1474_v59 }
0x1b3d   :  { %v1435_v50 = vpop.permute.xlu1 %1434 }
0x1b3e   :  { %v1466_v54 = vrot.slane %v1435_v50, %v2636_v18 }
0x1b40   :  { %v1476_v14 = vsel %vm1333_vm14, %v1466_v54, %v1475_v61 }
0x1b41   :  { %v1438_v60 = vpop.permute.xlu1 %1437 }
0x1b42   :  { %v1470_v63 = vrot.slane %v1438_v60, %v2636_v18 }
0x1b44   :  { %v1477_v16 = vsel %vm1335_vm15, %v1470_v63, %v1476_v14 }
0x1b45   :  { %v1479_v19 = vsel %vm1338_vm2, %v1477_v16, 0.0 }
0x1b46   :  { %1480 = vadd.xlane.f32.xlu1 %v1479_v19 }
0x1bd3   :  { %v1481_v15 = vpop.xlane.xlu1 %1480 }
0x1bd4   :  { %2244 = vrcp.f32 %v1481_v15 }
0x1bde   :  { %v2245_v20 = vpop.eup %2244 }
0x1bdf   :  { %v1487_v23 = vrot.slane %v2245_v20, %v2618_v12  ;;  %v1491_v25 = vrot.slane %v2245_v20, %v1349_v41  ;;  %v1495_v27 = vrot.slane %v2245_v20, %v1353_v42  ;;  %v1499_v35 = vrot.slane %v2245_v20, %v1357_v43 }
0x1be0   :  { %v1503_v12 = vrot.slane %v2245_v20, %v1361_v51  ;;  %v1507_v42 = vrot.slane %v2245_v20, %v1365_v57  ;;  %v1511_v43 = vrot.slane %v2245_v20, %v1369_v62  ;;  %v1515_v51 = vrot.slane %v2245_v20, %v1373_v17 }
0x1be1   :  { %v1524_v24 = vmul.f32 %v2229_v21, %v1487_v23  ;;  %v1525_v26 = vmul.f32 %v2231_v22, %v1491_v25  ;;  %v1526_v48 = vmul.f32 %v2233_v56, %v1495_v27  ;;  %v1527_v40 = vmul.f32 %v2235_v31, %v1499_v35 }
0x1be2   :  { %v1528_v22 = vmul.f32 %v2237_v30, %v1503_v12  ;;  %v1529_v45 = vmul.f32 %v2239_v36, %v1507_v42  ;;  %v1530_v47 = vmul.f32 %v2241_v32, %v1511_v43  ;;  %v1531_v39 = vmul.f32 %v2676_v33, %v1515_v51 }
0x1be3   :  { %v1532_v28 = vpack.c.bf16 %v1524_v24, %v1524_v24  ;;  %v1533_v34 = vpack.c.bf16 %v1525_v26, %v1525_v26  ;;  %v1534_v38 = vpack.c.bf16 %v1526_v48, %v1526_v48  ;;  %v1535_v21 = vpack.c.bf16 %v1527_v40, %v1527_v40 }
0x1be4   :  { %v1536_v56 = vpack.c.bf16 %v1528_v22, %v1528_v22  ;;  %v1537_v31 = vpack.c.bf16 %v1529_v45, %v1529_v45  ;;  %v1538_v30 = vpack.c.bf16 %v1530_v47, %v1530_v47  ;;  %v1539_v52 = vpack.c.bf16 %v1531_v39, %v1531_v39 }
0x1be5   :  { %v1548_v29 = vunpack.c.l.b16 %v1532_v28  ;;  %v1549_v37 = vunpack.c.l.b16 %v1533_v34  ;;  %v1550_v41 = vunpack.c.l.b16 %v1534_v38  ;;  %v1551_v44 = vunpack.c.l.b16 %v1535_v21 }
0x1be6   :  { %v1552_v46 = vunpack.c.l.b16 %v1536_v56  ;;  %v1553_v50 = vunpack.c.l.b16 %v1537_v31  ;;  %v1554_v57 = vunpack.c.l.b16 %v1538_v30  ;;  %v1555_v36 = vunpack.c.l.b16 %v1539_v52 }
0x1be7   :  { %1557 = vperm.xlu0 %2128, %v1548_v29  }
0x1beb   :  { %1560 = vperm.xlu0 %2128, %v1549_v37  }
0x1bef   :  { %1563 = vperm.xlu0 %2128, %v1550_v41  }
0x1bf3   :  { %1566 = vperm.xlu0 %2128, %v1551_v44  }
0x1bf7   :  { %1569 = vperm.xlu0 %2128, %v1552_v46  }
0x1bfb   :  { %1572 = vperm.xlu0 %2128, %v1553_v50  }
0x1bff   :  { %1575 = vperm.xlu0 %2128, %v1554_v57  }
0x1c03   :  { %1578 = vperm.xlu0 %2128, %v1555_v36  }
0x1c66   :  { %v1558_v53 = vpop.permute.xlu0 %1557 }
0x1c67   :  { %v1583_v60 = vrot.slane %v1558_v53, %v2636_v18 }
0x1c6a   :  { %v1561_v62 = vpop.permute.xlu0 %1560 }
0x1c6b   :  { %v1587_v58 = vrot.slane %v1561_v62, %v2636_v18 }
0x1c6d   :  { %v1612_v14 = vsel %vm1323_vm9, %v1587_v58, %v1583_v60 }
0x1c6e   :  { %v1564_v54 = vpop.permute.xlu0 %1563 }
0x1c6f   :  { %v1591_v17 = vrot.slane %v1564_v54, %v2636_v18 }
0x1c71   :  { %v1613_v19 = vsel %vm1325_vm10, %v1591_v17, %v1612_v14 }
0x1c72   :  { %v1567_v55 = vpop.permute.xlu0 %1566 }
0x1c73   :  { %v1595_v33 = vrot.slane %v1567_v55, %v2636_v18 }
0x1c75   :  { %v1614_v20 = vsel %vm1327_vm11, %v1595_v33, %v1613_v19 }
0x1c76   :  { %v1570_v59 = vpop.permute.xlu0 %1569 }
0x1c77   :  { %v1599_v61 = vrot.slane %v1570_v59, %v2636_v18 }
0x1c79   :  { %v1615_v23 = vsel %vm1329_vm12, %v1599_v61, %v1614_v20 }
0x1c7a   :  { %v1573_v32 = vpop.permute.xlu0 %1572 }
0x1c7b   :  { %v1603_v16 = vrot.slane %v1573_v32, %v2636_v18 }
0x1c7d   :  { %v1616_v24 = vsel %vm1331_vm13, %v1603_v16, %v1615_v23 }
0x1c7e   :  { %v1576_v63 = vpop.permute.xlu0 %1575 }
0x1c7f   :  { %v1607_v15 = vrot.slane %v1576_v63, %v2636_v18 }
0x1c81   :  { %v1617_v27 = vsel %vm1333_vm14, %v1607_v15, %v1616_v24 }
0x1c82   :  { %v1579_v25 = vpop.permute.xlu0 %1578 }
0x1c83   :  { %v1611_v26 = vrot.slane %v1579_v25, %v2636_v18 }
0x1c85   :  { %v1618_v28 = vsel %vm1335_vm15, %v1611_v26, %v1617_v27 }
0x1c86   :  { %v1619_v29 = vpack.c.b16 %v1618_v28, %v1618_v28 }
0x1c88   :  { %2081 = vmatmul.mubr.msk.bf16.vlgmr.msra.gmra.mrb[28].mxu0 %vm1338_vm2, %v1619_v29 }
0x1d5b   :  { %v1659_v34 = vpop.f32.mrb[28].mxu0 }
0x1d5c   :  { %v2082_v48 = vpop.f32.mrb[29].mxu0 }
0x1d5d   :  { %v1662_v35 = vpop.f32.mrb[30].mxu0 }
0x1d5e   :  { %v2083_v37 = vpop.f32.mrb[31].mxu0 }
0x1d5f   :  { %2268 = dma.done.wait [#allocation5], 256 }
0x1d60   :  { %2269 = vsyncadd [#allocation5], 4294967040 }
0x1d61   :  { %2270 = dma.done.wait [#allocation5 + $0x1], 256 }
0x1d62   :  { %2271 = vsyncadd [#allocation5 + $0x1], 4294967040  ;;  %2084 = vmatprep.subr.bf16.mxu1 %v2276_v13  ;;  %2092 = vmatprep.subr.bf16.mxu0 %v2276_v13 }
0x1d63   :  { %2272 = dma.done.wait [#allocation5 + $0x2], 1024 }
0x1d64   :  { %2273 = vsyncadd [#allocation5 + $0x2], 4294966272  ;;  %2085 = vmatpush3.bf16.msra.mxu1 %v2382_v2  ;;  %2093 = vmatpush3.bf16.msra.mxu0 %v2372_v0  ;;  %v1675_v18 = vpack.c.bf16 %v1659_v34, %v1659_v34  ;;  %v1924_v2 = vld [vmem:[%s2791_s13] ss:$0 sm:$0xff]  ;;  %s2283_s12 = smov [#allocation6]  }
0x1d65   :  { %2086 = vmatprep.subr.bf16.mxu1 %v2276_v13  ;;  %2094 = vmatprep.subr.bf16.mxu0 %v2276_v13  ;;  %s1834_s21 = sshll.u32 %s2283_s12, 4  ;;  %s1835_s21 = int_to_ptr.vmem [resolvable:$true] %s1834_s21 }
0x1d66   :  { %2088 = vmatprep.mubr.msk.bf16.mxu1 %vm2277_vm1, %v2276_v13  ;;  %2096 = vmatprep.mubr.msk.bf16.mxu0 %vm2277_vm1, %v2276_v13  ;;  %s2246_s13 = scalar_lea.vmem %s1835_s21, 128  ;;  %p2251_p1 = scmp.lt.s32.totalorder %s1835_s21, %s1835_s21 }
0x1d67   :  { %p2247_p0 = scmp.ne.s32.totalorder %s1835_s21, %s2246_s13  ;;  %p2252_p2 = scmp.lt.s32.totalorder %s2246_s13, %s2246_s13 }
0x1d68   :  { %2087 = vmatpush3.bf16.msra.mxu1 %v2387_v3  ;;  %2095 = vmatpush3.bf16.msra.mxu0 %v2377_v1 }
0x1d69   :  { %2100 = vmatprep.subr.bf16.mxu1 %v2276_v13  ;;  %p2253_p3 = por %p2252_p2, %p2251_p1 }
0x1d6b   :  { %2089 = vmatmul.mubr.msk.bf16.vlgmr.msra.gmra.mrb[20].mxu1 %vm220_vm0, %v2606_v49  ;;  %2097 = vmatmul.mubr.msk.bf16.vlgmr.msra.gmra.mrb[32].mxu0 %vm220_vm0, %v1675_v18  ;;  %p2254_p4 = pnand %p2253_p3, %p2247_p0 }
0x1d6c   :  { %2101 = vmatpush3.bf16.msra.mxu1 %v2392_v4  ;;  %2116 = vmatprep.mubr.msk.bf16.mxu1 %vm2277_vm1, %v2276_v13 }
0x1d6d   :  { %2102 = vmatprep.subr.bf16.mxu1 %v2276_v13 }
0x1d70   :  { %2103 = vmatpush3.bf16.msra.mxu1 %v2397_v5 }
0x1d71   :  { %2104 = vmatprep.subr.bf16.mxu1 %v2276_v13 }
0x1d74   :  { %2105 = vmatpush3.bf16.msra.mxu1 %v2402_v6 }
0x1d75   :  { %2106 = vmatprep.subr.bf16.mxu1 %v2276_v13 }
0x1d78   :  { %2107 = vmatpush3.bf16.msra.mxu1 %v2407_v7 }
0x1d79   :  { %2108 = vmatprep.subr.bf16.mxu1 %v2276_v13 }
0x1d7c   :  { %2109 = vmatpush3.bf16.msra.mxu1 %v2412_v8 }
0x1d7d   :  { %2110 = vmatprep.subr.bf16.mxu1 %v2276_v13 }
0x1d80   :  { %2111 = vmatpush3.bf16.msra.mxu1 %v2417_v9 }
0x1d81   :  { %2112 = vmatprep.subr.bf16.mxu1 %v2276_v13 }
0x1d84   :  { %2113 = vmatpush3.bf16.msra.mxu1 %v2422_v10  ;;  %v1925_v10 = vld [vmem:[%s2793_s15] ss:$0 sm:$0xff] }
0x1d85   :  { %2114 = vmatprep.subr.bf16.mxu1 %v2276_v13 }
0x1d88   :  { %2115 = vmatpush3.bf16.msra.mxu1 %v2427_v11 }
0x1e3e   :  { %v1714_v0 = vpop.f32.mrb[20].mxu1  ;;  %v1757_v1 = vpop.f32.mrb[32].mxu0 }
0x1e3f   :  { %v1758_v3 = vadd.f32 %v1757_v1, %v1714_v0  ;;  %v2090_v4 = vpop.f32.mrb[21].mxu1  ;;  %v2098_v5 = vpop.f32.mrb[33].mxu0 }
0x1e40   :  { %v1717_v6 = vpop.f32.mrb[22].mxu1  ;;  %v1760_v7 = vpop.f32.mrb[34].mxu0 }
0x1e41   :  { %v1770_v8 = vadd.f32 %v1924_v2, %v1758_v3  ;;  %v2091_v9 = vpop.f32.mrb[23].mxu1  ;;  %v2099_v49 = vpop.f32.mrb[35].mxu0 }
0x1e43   :  { %v1771_v38 = vpack.c.bf16 %v1770_v8, %v1770_v8 }
0x1e45   :  { %2117 = vmatmul.mubr.bf16.vlgmr.msra.gmra.mrb[24].mxu1 %v1771_v38 }
0x1f18   :  { %v1821_v11 = vpop.f32.mrb[24].mxu1 }
0x1f19   :  { %v1822_v13 = vadd.f32 %v1925_v10, %v1821_v11  ;;  %v2118_v40 = vpop.f32.mrb[25].mxu1 }
0x1f1a   :  { %v1824_v12 = vpop.f32.mrb[26].mxu1 }
0x1f1b   :  { %1827 = vst [vmem:[#allocation6] sm:$0xff] %v1822_v13  ;;  %v2119_v41 = vpop.f32.mrb[27].mxu1 }
0x1f1c   :  { %2257 = shalt.err (!%p2254_p4)
}
0x1f1d   :  { %s2258_s15 = scalar_lea.hbm %s2794_s16, 128 }
0x1f1e   :  { %p2259_p5 = scmp.ne.s32.totalorder %s2794_s16, %s2258_s15  ;;  %p2262_p6 = scmp.lt.u32.totalorder %s2258_s15, %s2794_s16 }
0x1f20   :  { %p2264_p7 = pnand %p2262_p6, %p2259_p5 }
0x1f22   :  { %2267 = shalt.err (!%p2264_p7)
}
0x1f23   :  { %1837 = dma.vmem_to_hbm [thread:$0]  %s1835_s21, 128, %s2794_s16, [#allocation7]  }
0x1f24   :  { %2274 = dma.done.wait [#allocation7], 128  }
0x1f25   :  { %2275 = vsyncadd [#allocation7], 4294967168 }
0x1f26   :  { %1841 = vsyncpa [#allocation7], 1 }
0x1f27   :  { %1842 = vsyncmov [#allocation5] }
0x1f2a   :  { %s1843_s4 = vpop.sfrf %1842 }
0x1f2b   :  { %p1926_p8 = scmp.ne.s32.totalorder %s1843_s4, 0 }
0x1f2d   :  { %1847 = shalt.err (%p1926_p8)  }
0x1f2e   :  { %1849 = vsyncmov [#allocation5 + $0x1] }
0x1f31   :  { %s1850_s5 = vpop.sfrf %1849 }
0x1f32   :  { %p1927_p9 = scmp.ne.s32.totalorder %s1850_s5, 0 }
0x1f34   :  { %1854 = shalt.err (%p1927_p9)  }
0x1f35   :  { %1856 = vsyncmov [#allocation5 + $0x2] }
0x1f38   :  { %s1857_s6 = vpop.sfrf %1856 }
0x1f39   :  { %p1928_p10 = scmp.ne.s32.totalorder %s1857_s6, 0 }
0x1f3b   :  { %1861 = shalt.err (%p1928_p10)  }

</bundles_post_ra>
